<compile_context>
chip_gen: v5e
topology: v5e:2x2
jax: 0.10.0
libtpu: 0.0.40
codegen_flags: <defaults>
</compile_context>

<pallas_src>
import functools
import math

import jax
import jax.numpy as jnp
from jax.experimental import pallas as pl
from jax.experimental.pallas import tpu as pltpu


def _pooler_kernel(x_ref, ws_ref, bs_ref, wv_ref, bv_ref, wo_ref, bo_ref,
                   ln_g_ref, ln_b_ref, wm_ref, bm_ref, hmt_ref, out_ref,
                   *, precision, approx_recip):
    L, TN, D = x_ref.shape
    H = hmt_ref.shape[0]

    # Layer-major block with TN a multiple of 16: merging (L, TN) into the
    # sublane axis is layout-trivial (no concat, no extra VMEM copy).
    x2 = x_ref[...].reshape(L * TN, D)                                    # (L*TN, D)

    # ---- scores: q proj, k proj, q*k and per-head sum are folded by the
    # wrapper into (W_score, b_score):  s = x @ W_score + b_score
    s = jnp.dot(x2, ws_ref[...], preferred_element_type=jnp.float32,
                precision=precision) + bs_ref[...]                        # (L*TN, H)

    # ---- per-(token, head) softmax over the L layers (f32 VPU/EUP math) ----
    s3 = s.reshape(L, TN, H)
    m = jnp.max(s3, axis=0)                                               # (TN, H)
    e = jnp.exp(s3 - m[None])                                             # (L, TN, H)
    denom = jnp.sum(e, axis=0)                                            # (TN, H)
    if approx_recip:
        inv = pl.reciprocal(denom, approx=True)
    else:
        inv = 1.0 / denom
    p_all = (e * inv[None]).reshape(L * TN, H)                            # (L*TN, H) f32

    # ---- value projection: placed late to shorten the live range of v ----
    v = jnp.dot(x2, wv_ref[...], preferred_element_type=jnp.float32,
                precision=precision) + bv_ref[...]                        # (L*TN, D)

    # Broadcast each head's prob across that head's dims and weight the values.
    # TODO(synk): if profiling shows the MXU slot saturated at real D, replace
    # this K=H matmul with an XLU lane replication of p across each head's hd lanes.
    pv = jnp.dot(p_all.astype(hmt_ref.dtype), hmt_ref[...],
                 preferred_element_type=jnp.float32,
                 precision=precision) * v                                 # (L*TN, D)
    o = jnp.sum(pv.reshape(L, TN, D), axis=0)                             # (TN, D)

    # ---- attention output projection ----
    attn = jnp.dot(o.astype(wo_ref.dtype), wo_ref[...],
                   preferred_element_type=jnp.float32,
                   precision=precision) + bo_ref[...]                     # (TN, D)

    # ---- LayerNorm (eps=1e-5, biased variance, affine) ----
    mu = jnp.mean(attn, axis=-1, keepdims=True)
    var = jnp.mean((attn - mu) ** 2, axis=-1, keepdims=True)
    y = (attn - mu) * jax.lax.rsqrt(var + 1e-5) * ln_g_ref[...] + ln_b_ref[...]

    # ---- residual + MLP block (mlp_type='linear') ----
    out = attn + jnp.dot(y.astype(wm_ref.dtype), wm_ref[...],
                         preferred_element_type=jnp.float32,
                         precision=precision) + bm_ref[...]
    out_ref[...] = out.astype(out_ref.dtype)


def layer_output_pooler(x, params, num_heads, *, compute_dtype=jnp.bfloat16,
                        token_block=None):
    B, S, L, D = x.shape
    N = B * S
    H = num_heads
    hd = D // H
    f32 = jnp.float32
    highest = jax.lax.Precision.HIGHEST
    cdt = jnp.dtype(compute_dtype)
    # bf16 operands run at native MXU rate with f32 accumulation; the exact f32
    # verification path requests HIGHEST precision per dot.
    is_f32 = cdt == jnp.dtype(jnp.float32)
    precision = highest if is_f32 else jax.lax.Precision.DEFAULT
    approx_recip = not is_f32

    # ---- grid-invariant folding (runs once in the wrapper, not per grid step) --
    probe = params["probe"].reshape(1, D).astype(f32)
    q = (jnp.dot(probe, params["wq"].T.astype(f32), precision=highest)
         + params["bq"].astype(f32)) * (hd ** -0.5)                        # (1, D)
    # s[n,l,h] = sum_{d in head h} (x @ wk.T + bk)[n,l,d] * q[d]
    #          = (x @ W_score + b_score)[n,l,h]
    wk_scaled = params["wk"].T.astype(f32) * q                             # (D, D)
    w_score = wk_scaled.reshape(D, H, hd).sum(axis=-1)                     # (D, H)
    b_score = (params["bk"].astype(f32) * q[0]).reshape(H, hd).sum(axis=-1).reshape(1, H)
    # one-hot head membership (H, D): broadcasts per-head probs to full width
    hmask_t = (jnp.arange(D)[None, :] // hd == jnp.arange(H)[:, None]).astype(f32)

    # ---- token block: L*tn MXU rows per matmul, tn a multiple of 16 ------------
    if token_block is None:
        tn = -(-512 // L)                              # target ~512 matmul rows
        tn = max(16, -(-tn // 16) * 16)
        # round L*tn up to a multiple of 256 (MXU row dim on v6e/v7x)
        step = 256 // math.gcd(L, 256)
        step = (step * 16) // math.gcd(step, 16)       # lcm(step, 16)
        tn = -(-tn // step) * step
    else:
        tn = max(16, -(-int(token_block) // 16) * 16)
    # don't over-pad tiny inputs
    tn = min(tn, max(16, -(-N // 16) * 16))
    # give v7x's two TensorCores at least two token blocks when N allows it
    if N > 16:
        half = max(16, -(-((N + 1) // 2) // 16) * 16)
        tn = min(tn, half)
    n_pad = -(-N // tn) * tn
    grid = (n_pad // tn,)

    # Layer-major layout (L, N, D); cast to the compute dtype BEFORE the
    # transpose+pad so the relayout moves half the HBM bytes.
    # TODO(synk): produce x in (L, N, D) layout upstream to remove this transpose.
    xt = jnp.transpose(x.astype(cdt).reshape(N, L, D), (1, 0, 2))
    if n_pad != N:
        xt = jnp.pad(xt, ((0, 0), (0, n_pad - N), (0, 0)))

    b2 = lambda b: b.reshape(1, D).astype(f32)
    operands = (
        xt,
        w_score.astype(cdt), b_score,
        params["wv"].T.astype(cdt), b2(params["bv"]),
        params["wo"].T.astype(cdt), b2(params["bo"]),
        b2(params["ln_g"]), b2(params["ln_b"]),
        params["wm"].T.astype(cdt), b2(params["bm"]),
        hmask_t.astype(cdt),
    )

    # Grid-invariant operands: constant index_map + single buffer (never
    # re-fetched), halving their resident VMEM footprint.
    # TODO(synk): at production llm_dim (D >= ~3K) the three (D, D) weights do
    # not fit v7x's 64 MiB VMEM even single-buffered; keep them in HBM
    # (memory_space=pl.ANY) and stream D-chunks with pltpu.emit_pipeline.
    def const_spec(a):
        nd = a.ndim
        return pl.BlockSpec(a.shape, lambda i: (0,) * nd,
                            pipeline_mode=pl.Buffered(1))

    in_specs = [pl.BlockSpec((L, tn, D), lambda i: (0, i, 0))]
    in_specs += [const_spec(a) for a in operands[1:]]

    # advisory cost estimate so XLA can schedule around the custom call
    const_bytes = sum(int(a.size) * a.dtype.itemsize for a in operands[1:])
    flops = 2 * n_pad * D * (L * D + 2 * L * H + 2 * D)
    cost = pl.CostEstimate(
        flops=int(flops),
        transcendentals=int(n_pad * L * H + n_pad),
        bytes_accessed=int(int(xt.size) * xt.dtype.itemsize
                           + n_pad * D * 4 + const_bytes),
    )

    # VMEM budget: double-buffered x/output blocks + single-buffered constants
    # + f32 in-kernel temporaries (s, v, pv, p).
    in_block_bytes = L * tn * D * xt.dtype.itemsize
    out_block_bytes = tn * D * 4
    interm_bytes = 3 * L * tn * D * 4 + 4 * tn * D * 4
    vmem_needed = 2 * (in_block_bytes + out_block_bytes) + const_bytes + interm_bytes

    try:
        phys_vmem = int(pltpu.get_tpu_info().vmem_capacity_bytes)
    except Exception:
        phys_vmem = 128 * 1024 * 1024
    default_scoped = 16 * 1024 * 1024          # v5e default scoped limit (v6e/v7x: 32 MiB)
    if vmem_needed > default_scoped:
        cap = (phys_vmem * 7) // 8             # headroom for Mosaic internal scratch
        vmem_limit = int(min(max(vmem_needed * 3 // 2, 32 * 1024 * 1024), cap))
    else:
        vmem_limit = None

    out = pl.pallas_call(
        functools.partial(_pooler_kernel, precision=precision,
                          approx_recip=approx_recip),
        out_shape=jax.ShapeDtypeStruct((n_pad, D), jnp.float32),
        grid_spec=pltpu.PrefetchScalarGridSpec(
            num_scalar_prefetch=0,
            grid=grid,
            in_specs=in_specs,
            out_specs=pl.BlockSpec((tn, D), lambda i: (i, 0)),
        ),
        compiler_params=pltpu.CompilerParams(
            dimension_semantics=("parallel",),   # v7x: both TCs split token blocks
            vmem_limit_bytes=vmem_limit,
        ),
        cost_estimate=cost,
    )(*operands)
    return out[:N].reshape(B, S, D)


def reference(x, params, num_heads):
    """Pure-JAX reference matching torch.nn.MultiheadAttention + LN + linear MLP."""
    B, S, L, D = x.shape
    N = B * S
    H = num_heads
    hd = D // H
    with jax.default_matmul_precision("highest"):
        x2 = x.reshape(N, L, D)
        q = params["probe"].reshape(1, D) @ params["wq"].T + params["bq"]   # (1, D)
        k = x2 @ params["wk"].T + params["bk"]                              # (N, L, D)
        v = x2 @ params["wv"].T + params["bv"]
        qh = (q * (hd ** -0.5)).reshape(H, hd)
        kh = k.reshape(N, L, H, hd)
        vh = v.reshape(N, L, H, hd)
        s = jnp.einsum("nlhe,he->nhl", kh, qh)
        p = jax.nn.softmax(s, axis=-1)
        o = jnp.einsum("nhl,nlhe->nhe", p, vh).reshape(N, D)
        attn = o @ params["wo"].T + params["bo"]
        mu = attn.mean(-1, keepdims=True)
        var = ((attn - mu) ** 2).mean(-1, keepdims=True)
        y = (attn - mu) / jnp.sqrt(var + 1e-5) * params["ln_g"] + params["ln_b"]
        out = attn + y @ params["wm"].T + params["bm"]
    return out.reshape(B, S, D)


if __name__ == "__main__":
    # small shapes consistent with the module: x is (batch, seq, num_layers, llm_dim)
    B, S, L, D, H = 2, 8, 4, 32, 4      # llm_dim=32, num_heads=4 -> head_dim=8
    key = jax.random.PRNGKey(0)
    ks = jax.random.split(key, 14)

    # deterministic synthetic parameter init (shapes follow the module's __init__;
    # mlp_type='linear', so the MLP block is a single Linear(llm_dim, llm_dim)).
    params = {
        "probe": jax.random.normal(ks[0], (1, 1, D), jnp.float32) * 0.02,
        "wq": jax.random.normal(ks[1], (D, D), jnp.float32) * 0.05,   # in_proj_weight[:D]
        "bq": jax.random.normal(ks[2], (D,), jnp.float32) * 0.05,
        "wk": jax.random.normal(ks[3], (D, D), jnp.float32) * 0.05,   # in_proj_weight[D:2D]
        "bk": jax.random.normal(ks[4], (D,), jnp.float32) * 0.05,
        "wv": jax.random.normal(ks[5], (D, D), jnp.float32) * 0.05,   # in_proj_weight[2D:]
        "bv": jax.random.normal(ks[6], (D,), jnp.float32) * 0.05,
        "wo": jax.random.normal(ks[7], (D, D), jnp.float32) * 0.05,   # out_proj
        "bo": jax.random.normal(ks[8], (D,), jnp.float32) * 0.05,
        "ln_g": jnp.ones((D,), jnp.float32),                          # LayerNorm weight
        "ln_b": jnp.zeros((D,), jnp.float32),                         # LayerNorm bias
        "wm": jax.random.normal(ks[9], (D, D), jnp.float32) * 0.05,   # MLP Linear weight
        "bm": jax.random.normal(ks[10], (D,), jnp.float32) * 0.05,    # MLP Linear bias
    }
    x = jax.random.normal(ks[13], (B, S, L, D), jnp.float32)

    ref = reference(x, params, H)

    # 1) exact-semantics check: f32 compute path, tight tolerance
    out_f32 = jax.block_until_ready(
        layer_output_pooler(x, params, H, compute_dtype=jnp.float32))
    assert out_f32.shape == (B, S, D)
    err32 = float(jnp.max(jnp.abs(out_f32 - ref)))
    if not bool(jnp.allclose(out_f32, ref, atol=2e-3, rtol=2e-2)):
        raise AssertionError(f"f32 Pallas kernel mismatch vs reference: max abs err {err32}")

    # 2) fast path: bf16 matmul operands, f32 accumulation / elementwise math
    out_bf16 = jax.block_until_ready(layer_output_pooler(x, params, H))
    assert out_bf16.shape == (B, S, D)
    errbf = float(jnp.max(jnp.abs(out_bf16 - ref)))
    if not bool(jnp.allclose(out_bf16, ref, atol=5e-2, rtol=5e-2)):
        raise AssertionError(f"bf16 Pallas kernel mismatch vs reference: max abs err {errbf}")

    print("KERNEL_OK")
</pallas_src>

<mosaic_0001>
module attributes {stable_mosaic.version = 11 : i64} {
  func.func @_pooler_kernel(%arg0: i32, %arg1: memref<4x16x32xf32, #tpu.memory_space<vmem>>, %arg2: memref<32x4xf32, #tpu.memory_space<vmem>>, %arg3: memref<1x4xf32, #tpu.memory_space<vmem>>, %arg4: memref<32x32xf32, #tpu.memory_space<vmem>>, %arg5: memref<1x32xf32, #tpu.memory_space<vmem>>, %arg6: memref<32x32xf32, #tpu.memory_space<vmem>>, %arg7: memref<1x32xf32, #tpu.memory_space<vmem>>, %arg8: memref<1x32xf32, #tpu.memory_space<vmem>>, %arg9: memref<1x32xf32, #tpu.memory_space<vmem>>, %arg10: memref<32x32xf32, #tpu.memory_space<vmem>>, %arg11: memref<1x32xf32, #tpu.memory_space<vmem>>, %arg12: memref<4x32xf32, #tpu.memory_space<vmem>>, %arg13: memref<16x32xf32, #tpu.memory_space<vmem>>) attributes {dimension_semantics = [#tpu.dimension_semantics<parallel>], iteration_bounds = array<i64: 1>, scalar_prefetch = 0 : i64, scratch_operands = 0 : i64, tpu.core_type = #tpu.core_type<tc>, window_params = [{transform_indices = @transform_0, window_bounds = array<i64: 4, 16, 32>}, {pipeline_mode = #tpu.pipeline_mode<synchronous>, transform_indices = @transform_1, window_bounds = array<i64: 32, 4>}, {pipeline_mode = #tpu.pipeline_mode<synchronous>, transform_indices = @transform_2, window_bounds = array<i64: 1, 4>}, {pipeline_mode = #tpu.pipeline_mode<synchronous>, transform_indices = @transform_3, window_bounds = array<i64: 32, 32>}, {pipeline_mode = #tpu.pipeline_mode<synchronous>, transform_indices = @transform_4, window_bounds = array<i64: 1, 32>}, {pipeline_mode = #tpu.pipeline_mode<synchronous>, transform_indices = @transform_5, window_bounds = array<i64: 32, 32>}, {pipeline_mode = #tpu.pipeline_mode<synchronous>, transform_indices = @transform_6, window_bounds = array<i64: 1, 32>}, {pipeline_mode = #tpu.pipeline_mode<synchronous>, transform_indices = @transform_7, window_bounds = array<i64: 1, 32>}, {pipeline_mode = #tpu.pipeline_mode<synchronous>, transform_indices = @transform_8, window_bounds = array<i64: 1, 32>}, {pipeline_mode = #tpu.pipeline_mode<synchronous>, transform_indices = @transform_9, window_bounds = array<i64: 32, 32>}, {pipeline_mode = #tpu.pipeline_mode<synchronous>, transform_indices = @transform_10, window_bounds = array<i64: 1, 32>}, {pipeline_mode = #tpu.pipeline_mode<synchronous>, transform_indices = @transform_11, window_bounds = array<i64: 4, 32>}, {transform_indices = @transform_12, window_bounds = array<i64: 16, 32>}]} {
    %c0 = arith.constant 0 : index
    %c0_0 = arith.constant 0 : index
    %c0_1 = arith.constant 0 : index
    %0 = vector.load %arg1[%c0, %c0_0, %c0_1] : memref<4x16x32xf32, #tpu.memory_space<vmem>>, vector<4x16x32xf32>
    %1 = vector.shape_cast %0 : vector<4x16x32xf32> to vector<64x32xf32>
    %c0_2 = arith.constant 0 : index
    %c0_3 = arith.constant 0 : index
    %2 = vector.load %arg2[%c0_2, %c0_3] : memref<32x4xf32, #tpu.memory_space<vmem>>, vector<32x4xf32>
    %cst = arith.constant dense<0.000000e+00> : vector<64x4xf32>
    %3 = tpu.matmul %1, %2, %cst {dimension_numbers = #tpu.dot_dimension_numbers<[1], [0], [0], [1], [0, 0, 1, 1], [], []>, precision = #tpu.contract_precision<fp32>} : vector<64x32xf32>, vector<32x4xf32>, vector<64x4xf32> -> vector<64x4xf32>
    %c0_4 = arith.constant 0 : index
    %c0_5 = arith.constant 0 : index
    %4 = vector.load %arg3[%c0_4, %c0_5] : memref<1x4xf32, #tpu.memory_space<vmem>>, vector<1x4xf32>
    %5 = vector.broadcast %4 : vector<1x4xf32> to vector<64x4xf32>
    %6 = arith.addf %3, %5 : vector<64x4xf32>
    %7 = vector.shape_cast %6 : vector<64x4xf32> to vector<4x16x4xf32>
    %cst_6 = arith.constant dense<0xFF800000> : vector<16x4xf32>
    %8 = vector.multi_reduction <maximumf>, %7, %cst_6 [0] : vector<4x16x4xf32> to vector<16x4xf32>
    %9 = vector.shape_cast %8 : vector<16x4xf32> to vector<1x16x4xf32>
    %10 = vector.broadcast %9 : vector<1x16x4xf32> to vector<4x16x4xf32>
    %11 = arith.subf %7, %10 : vector<4x16x4xf32>
    %12 = math.exp %11 : vector<4x16x4xf32>
    %cst_7 = arith.constant dense<0.000000e+00> : vector<16x4xf32>
    %13 = vector.multi_reduction <add>, %12, %cst_7 [0] : vector<4x16x4xf32> to vector<16x4xf32>
    %cst_8 = arith.constant 1.000000e+00 : f32
    %14 = vector.broadcast %cst_8 : f32 to vector<16x4xf32>
    %15 = arith.divf %14, %13 : vector<16x4xf32>
    %16 = vector.shape_cast %15 : vector<16x4xf32> to vector<1x16x4xf32>
    %17 = vector.broadcast %16 : vector<1x16x4xf32> to vector<4x16x4xf32>
    %18 = arith.mulf %12, %17 : vector<4x16x4xf32>
    %19 = vector.shape_cast %18 : vector<4x16x4xf32> to vector<64x4xf32>
    %c0_9 = arith.constant 0 : index
    %c0_10 = arith.constant 0 : index
    %20 = vector.load %arg4[%c0_9, %c0_10] : memref<32x32xf32, #tpu.memory_space<vmem>>, vector<32x32xf32>
    %cst_11 = arith.constant dense<0.000000e+00> : vector<64x32xf32>
    %21 = tpu.matmul %1, %20, %cst_11 {dimension_numbers = #tpu.dot_dimension_numbers<[1], [0], [0], [1], [0, 0, 1, 1], [], []>, precision = #tpu.contract_precision<fp32>} : vector<64x32xf32>, vector<32x32xf32>, vector<64x32xf32> -> vector<64x32xf32>
    %c0_12 = arith.constant 0 : index
    %c0_13 = arith.constant 0 : index
    %22 = vector.load %arg5[%c0_12, %c0_13] : memref<1x32xf32, #tpu.memory_space<vmem>>, vector<1x32xf32>
    %23 = vector.broadcast %22 : vector<1x32xf32> to vector<64x32xf32>
    %24 = arith.addf %21, %23 : vector<64x32xf32>
    %c0_14 = arith.constant 0 : index
    %c0_15 = arith.constant 0 : index
    %25 = vector.load %arg12[%c0_14, %c0_15] : memref<4x32xf32, #tpu.memory_space<vmem>>, vector<4x32xf32>
    %cst_16 = arith.constant dense<0.000000e+00> : vector<64x32xf32>
    %26 = tpu.matmul %19, %25, %cst_16 {dimension_numbers = #tpu.dot_dimension_numbers<[1], [0], [0], [1], [0, 0, 1, 1], [], []>, precision = #tpu.contract_precision<fp32>} : vector<64x4xf32>, vector<4x32xf32>, vector<64x32xf32> -> vector<64x32xf32>
    %27 = arith.mulf %26, %24 : vector<64x32xf32>
    %28 = vector.shape_cast %27 : vector<64x32xf32> to vector<4x16x32xf32>
    %cst_17 = arith.constant dense<0.000000e+00> : vector<16x32xf32>
    %29 = vector.multi_reduction <add>, %28, %cst_17 [0] : vector<4x16x32xf32> to vector<16x32xf32>
    %c0_18 = arith.constant 0 : index
    %c0_19 = arith.constant 0 : index
    %30 = vector.load %arg6[%c0_18, %c0_19] : memref<32x32xf32, #tpu.memory_space<vmem>>, vector<32x32xf32>
    %cst_20 = arith.constant dense<0.000000e+00> : vector<16x32xf32>
    %31 = tpu.matmul %29, %30, %cst_20 {dimension_numbers = #tpu.dot_dimension_numbers<[1], [0], [0], [1], [0, 0, 1, 1], [], []>, precision = #tpu.contract_precision<fp32>} : vector<16x32xf32>, vector<32x32xf32>, vector<16x32xf32> -> vector<16x32xf32>
    %c0_21 = arith.constant 0 : index
    %c0_22 = arith.constant 0 : index
    %32 = vector.load %arg7[%c0_21, %c0_22] : memref<1x32xf32, #tpu.memory_space<vmem>>, vector<1x32xf32>
    %33 = vector.broadcast %32 : vector<1x32xf32> to vector<16x32xf32>
    %34 = arith.addf %31, %33 : vector<16x32xf32>
    %cst_23 = arith.constant dense<0.000000e+00> : vector<16xf32>
    %35 = vector.multi_reduction <add>, %34, %cst_23 [1] : vector<16x32xf32> to vector<16xf32>
    %36 = vector.shape_cast %35 : vector<16xf32> to vector<16x1xf32>
    %cst_24 = arith.constant 3.200000e+01 : f32
    %37 = vector.broadcast %cst_24 : f32 to vector<16x1xf32>
    %38 = arith.divf %36, %37 : vector<16x1xf32>
    %39 = vector.broadcast %38 : vector<16x1xf32> to vector<16x32xf32>
    %40 = arith.subf %34, %39 : vector<16x32xf32>
    %41 = arith.mulf %40, %40 : vector<16x32xf32>
    %cst_25 = arith.constant dense<0.000000e+00> : vector<16xf32>
    %42 = vector.multi_reduction <add>, %41, %cst_25 [1] : vector<16x32xf32> to vector<16xf32>
    %43 = vector.shape_cast %42 : vector<16xf32> to vector<16x1xf32>
    %cst_26 = arith.constant 3.200000e+01 : f32
    %44 = vector.broadcast %cst_26 : f32 to vector<16x1xf32>
    %45 = arith.divf %43, %44 : vector<16x1xf32>
    %46 = vector.broadcast %38 : vector<16x1xf32> to vector<16x32xf32>
    %47 = arith.subf %34, %46 : vector<16x32xf32>
    %cst_27 = arith.constant 9.99999974E-6 : f32
    %48 = vector.broadcast %cst_27 : f32 to vector<16x1xf32>
    %49 = arith.addf %45, %48 : vector<16x1xf32>
    %50 = math.rsqrt %49 : vector<16x1xf32>
    %51 = vector.broadcast %50 : vector<16x1xf32> to vector<16x32xf32>
    %52 = arith.mulf %47, %51 : vector<16x32xf32>
    %c0_28 = arith.constant 0 : index
    %c0_29 = arith.constant 0 : index
    %53 = vector.load %arg8[%c0_28, %c0_29] : memref<1x32xf32, #tpu.memory_space<vmem>>, vector<1x32xf32>
    %54 = vector.broadcast %53 : vector<1x32xf32> to vector<16x32xf32>
    %55 = arith.mulf %52, %54 : vector<16x32xf32>
    %c0_30 = arith.constant 0 : index
    %c0_31 = arith.constant 0 : index
    %56 = vector.load %arg9[%c0_30, %c0_31] : memref<1x32xf32, #tpu.memory_space<vmem>>, vector<1x32xf32>
    %57 = vector.broadcast %56 : vector<1x32xf32> to vector<16x32xf32>
    %58 = arith.addf %55, %57 : vector<16x32xf32>
    %c0_32 = arith.constant 0 : index
    %c0_33 = arith.constant 0 : index
    %59 = vector.load %arg10[%c0_32, %c0_33] : memref<32x32xf32, #tpu.memory_space<vmem>>, vector<32x32xf32>
    %cst_34 = arith.constant dense<0.000000e+00> : vector<16x32xf32>
    %60 = tpu.matmul %58, %59, %cst_34 {dimension_numbers = #tpu.dot_dimension_numbers<[1], [0], [0], [1], [0, 0, 1, 1], [], []>, precision = #tpu.contract_precision<fp32>} : vector<16x32xf32>, vector<32x32xf32>, vector<16x32xf32> -> vector<16x32xf32>
    %61 = arith.addf %34, %60 : vector<16x32xf32>
    %c0_35 = arith.constant 0 : index
    %c0_36 = arith.constant 0 : index
    %62 = vector.load %arg11[%c0_35, %c0_36] : memref<1x32xf32, #tpu.memory_space<vmem>>, vector<1x32xf32>
    %63 = vector.broadcast %62 : vector<1x32xf32> to vector<16x32xf32>
    %64 = arith.addf %61, %63 : vector<16x32xf32>
    %c0_37 = arith.constant 0 : index
    %c0_38 = arith.constant 0 : index
    %65 = vector.load %arg13[%c0_37, %c0_38] : memref<16x32xf32, #tpu.memory_space<vmem>>, vector<16x32xf32>
    tpu.vector_store %arg13[%c0_37, %c0_38], %64 {strides = array<i32>} : memref<16x32xf32, #tpu.memory_space<vmem>>, vector<16x32xf32>,
    return
  }
  func.func @transform_0(%arg0: i32) -> (i32, i32, i32) {
    %c0_i32 = arith.constant 0 : i32
    %c0_i32_0 = arith.constant 0 : i32
    %c0_i32_1 = arith.constant 0 : i32
    return %c0_i32, %arg0, %c0_i32_0 : i32, i32, i32
  }
  func.func @transform_1(%arg0: i32) -> (i32, i32) {
    %c0_i32 = arith.constant 0 : i32
    %c0_i32_0 = arith.constant 0 : i32
    %c0_i32_1 = arith.constant 0 : i32
    return %c0_i32, %c0_i32_0 : i32, i32
  }
  func.func @transform_2(%arg0: i32) -> (i32, i32) {
    %c0_i32 = arith.constant 0 : i32
    %c0_i32_0 = arith.constant 0 : i32
    %c0_i32_1 = arith.constant 0 : i32
    return %c0_i32, %c0_i32_0 : i32, i32
  }
  func.func @transform_3(%arg0: i32) -> (i32, i32) {
    %c0_i32 = arith.constant 0 : i32
    %c0_i32_0 = arith.constant 0 : i32
    %c0_i32_1 = arith.constant 0 : i32
    return %c0_i32, %c0_i32_0 : i32, i32
  }
  func.func @transform_4(%arg0: i32) -> (i32, i32) {
    %c0_i32 = arith.constant 0 : i32
    %c0_i32_0 = arith.constant 0 : i32
    %c0_i32_1 = arith.constant 0 : i32
    return %c0_i32, %c0_i32_0 : i32, i32
  }
  func.func @transform_5(%arg0: i32) -> (i32, i32) {
    %c0_i32 = arith.constant 0 : i32
    %c0_i32_0 = arith.constant 0 : i32
    %c0_i32_1 = arith.constant 0 : i32
    return %c0_i32, %c0_i32_0 : i32, i32
  }
  func.func @transform_6(%arg0: i32) -> (i32, i32) {
    %c0_i32 = arith.constant 0 : i32
    %c0_i32_0 = arith.constant 0 : i32
    %c0_i32_1 = arith.constant 0 : i32
    return %c0_i32, %c0_i32_0 : i32, i32
  }
  func.func @transform_7(%arg0: i32) -> (i32, i32) {
    %c0_i32 = arith.constant 0 : i32
    %c0_i32_0 = arith.constant 0 : i32
    %c0_i32_1 = arith.constant 0 : i32
    return %c0_i32, %c0_i32_0 : i32, i32
  }
  func.func @transform_8(%arg0: i32) -> (i32, i32) {
    %c0_i32 = arith.constant 0 : i32
    %c0_i32_0 = arith.constant 0 : i32
    %c0_i32_1 = arith.constant 0 : i32
    return %c0_i32, %c0_i32_0 : i32, i32
  }
  func.func @transform_9(%arg0: i32) -> (i32, i32) {
    %c0_i32 = arith.constant 0 : i32
    %c0_i32_0 = arith.constant 0 : i32
    %c0_i32_1 = arith.constant 0 : i32
    return %c0_i32, %c0_i32_0 : i32, i32
  }
  func.func @transform_10(%arg0: i32) -> (i32, i32) {
    %c0_i32 = arith.constant 0 : i32
    %c0_i32_0 = arith.constant 0 : i32
    %c0_i32_1 = arith.constant 0 : i32
    return %c0_i32, %c0_i32_0 : i32, i32
  }
  func.func @transform_11(%arg0: i32) -> (i32, i32) {
    %c0_i32 = arith.constant 0 : i32
    %c0_i32_0 = arith.constant 0 : i32
    %c0_i32_1 = arith.constant 0 : i32
    return %c0_i32, %c0_i32_0 : i32, i32
  }
  func.func @transform_12(%arg0: i32) -> (i32, i32) {
    %c0_i32 = arith.constant 0 : i32
    %c0_i32_0 = arith.constant 0 : i32
    return %arg0, %c0_i32 : i32, i32
  }
}

</mosaic_0001>

<bundles_post_ra>
// kernel: tpu_custom_call.1
= control target key start
LH: loop header
LB: loop body
LE: loop exit
PB: predicated region body
PF: predicated region fallthrough
CT: control target
= control target key end

     0   :  { %17 = vsyncpa [#allocation3], 0  ;;  %s2915_s0 = inlined_call_operand.hbm [shape: f32[4,16,32], index: 0, kind: input, shape index: {}]   ;;  %s2916_s1 = inlined_call_operand.vmem [shape: f32[32,4], index: 1, kind: input, shape index: {}]   ;;  %s2917_s2 = inlined_call_operand.vmem [shape: f32[1,4], index: 2, kind: input, shape index: {}]   ;;  %s2918_s3 = inlined_call_operand.vmem [shape: f32[32,32], index: 3, kind: input, shape index: {}]   ;;  %s2919_s4 = inlined_call_operand.vmem [shape: f32[1,32], index: 4, kind: input, shape index: {}]   ;;  %s2920_s5 = inlined_call_operand.hbm [shape: f32[32,32], index: 5, kind: input, shape index: {}]   ;;  %s2921_s6 = inlined_call_operand.vmem [shape: f32[1,32], index: 6, kind: input, shape index: {}]   ;;  %s2922_s7 = inlined_call_operand.vmem [shape: f32[1,32], index: 7, kind: input, shape index: {}]   ;;  %s2923_s8 = inlined_call_operand.vmem [shape: f32[1,32], index: 8, kind: input, shape index: {}]   ;;  %s2924_s9 = inlined_call_operand.hbm [shape: f32[32,32], index: 9, kind: input, shape index: {}]   ;;  %s2925_s10 = inlined_call_operand.vmem [shape: f32[1,32], index: 10, kind: input, shape index: {}]   ;;  %s2926_s11 = inlined_call_operand.vmem [shape: f32[4,32], index: 11, kind: input, shape index: {}]   ;;  %s2927_s12 = inlined_call_operand.hbm [shape: f32[16,32], index: 12, kind: output, shape index: {}]  }
   0x1   :  { %18 = vsyncpa [#allocation6], 0 }
   0x2   :  { %19 = vsyncpa [#allocation4], 0  ;;  %s45_s23 = sshll.u32 %s2920_s5, 4  ;;  %s2137_s24 = smov [#allocation5]   ;;  %s46_s23 = int_to_ptr.hbm [resolvable:$true] %s45_s23 }
   0x3   :  { %s47_s25 = sshll.u32 %s2137_s24, 4  ;;  %s24_s28 = sshll.u32 %s2915_s0, 4  ;;  %s48_s25 = int_to_ptr.vmem [resolvable:$true] %s47_s25  ;;  %s25_s28 = int_to_ptr.hbm [resolvable:$true] %s24_s28 }
   0x4   :  { %s2138_s29 = smov 128   ;;  %s2139_s30 = smov 8  }
   0x5   :  { %53 = dma.hbm_to_vmem [thread:$0]  %s46_s23, 512, %s48_s25, [#allocation6], %s2138_s29, %s2138_s29, %s2139_s30  }
   0x6   :  { %s2140_s13 = smov [#allocation2]   ;;  %s64_s5 = sshll.u32 %s2924_s9, 4  ;;  %s65_s5 = int_to_ptr.hbm [resolvable:$true] %s64_s5 }
   0x7   :  { %s26_s14 = sshll.u32 %s2140_s13, 4  ;;  %s2141_s0 = smov [#allocation7]   ;;  %s27_s14 = int_to_ptr.vmem [resolvable:$true] %s26_s14 }
   0x8   :  { %32 = dma.hbm_to_vmem [thread:$0]  %s25_s28, 1024, %s27_s14, [#allocation3], %s2138_s29, %s2138_s29, %s2139_s30  }
   0x9   :  { %s66_s17 = sshll.u32 %s2141_s0, 4  ;;  %s67_s17 = int_to_ptr.vmem [resolvable:$true] %s66_s17 }
   0xa   :  { %72 = dma.hbm_to_vmem [thread:$0]  %s65_s5, 512, %s67_s17, [#allocation6], %s2138_s29, %s2138_s29, %s2139_s30  }
   0xb   :  { %2131 = dma.done.wait [#allocation3], 1024  }
   0xc   :  { %2132 = vsyncadd [#allocation3], 4294966272 }
   0xd   :  { %2133 = dma.done.wait [#allocation6], 1024  }
   0xe   :  { %2134 = vsyncadd [#allocation6], 4294966272  ;;  %vm105_vm0 = vcmask 261120   ;;  %v100_v0 = vld [vmem:[%s2916_s1 + $0x18] sm:$0xff]  ;;  %v99_v1 = vld [vmem:[%s2916_s1 + $0x10] sm:$0xff]  ;;  %vm1058_vm1 = vcmask 1043456  }
   0xf   :  { %v98_v2 = vld [vmem:[%s2916_s1 + $0x8] sm:$0xff]  ;;  %v2236_v3 = vand.u32 4294901760, %v100_v0  ;;  %v2238_v4 = vand.u32 4294901760, %v99_v1  ;;  %v97_v6 = vld [vmem:[%s2916_s1] sm:$0xff]  ;;  %v91_v12 = vld [vmem:[#allocation2 + $0x10] sm:$0xff]  ;;  %vm532_vm2 = vcmask 31744  }
  0x10   :  { %v2240_v5 = vand.u32 4294901760, %v98_v2  ;;  %v89_v7 = vld [vmem:[#allocation2] sm:$0xff]  ;;  %v90_v8 = vld [vmem:[#allocation2 + $0x8] sm:$0xff]  ;;  %v2245_v9 = vand.u32 4294901760, %v97_v6  ;;  %v113_v19 = vsel %vm105_vm0, %v91_v12, 0  ;;  %v92_v38 = vld [vmem:[#allocation2 + $0x18] sm:$0xff] }
  0x11   :  { %v107_v10 = vsel %vm105_vm0, %v89_v7, 0  ;;  %v110_v11 = vsel %vm105_vm0, %v90_v8, 0  ;;  %143 = vmatpush.msra.mxu0 %v2236_v3  ;;  %v228_v13 = vsub.f32 %v100_v0, %v2236_v3  ;;  %v234_v14 = vsub.f32 %v99_v1, %v2238_v4  ;;  %362 = vmatpush.msra.mxu3 %v2236_v3  ;;  %v93_v46 = vld [vmem:[#allocation2 + $0x20] sm:$0xff]  ;;  %v94_v53 = vld [vmem:[#allocation2 + $0x28] sm:$0xff]  ;;  %v95_v60 = vld [vmem:[#allocation2 + $0x30] sm:$0xff]  ;;  %s2143_s20 = smov [#allocation8]  }
  0x12   :  { %v240_v15 = vsub.f32 %v98_v2, %v2240_v5  ;;  %v2254_v16 = vand.u32 4294901760, %v107_v10  ;;  %v246_v17 = vsub.f32 %v97_v6, %v2245_v9  ;;  %v2257_v18 = vand.u32 4294901760, %v110_v11  ;;  %s1980_s21 = sshll.u32 %s2143_s20, 4  ;;  %s1982_s24 = sshll.u32 %s2927_s12, 4  ;;  %s1981_s21 = int_to_ptr.vmem [resolvable:$true] %s1980_s21  ;;  %s1983_s24 = int_to_ptr.hbm [resolvable:$true] %s1982_s24 }
  0x13   :  { %145 = vmatpush.msra.mxu0 %v2238_v4  ;;  %298 = vmatpush.msra.mxu2 %v228_v13  ;;  %v229_v20 = vand.u32 4294901760, %v228_v13  ;;  %v235_v22 = vand.u32 4294901760, %v234_v14  ;;  %v2273_v31 = vand.u32 4294901760, %v113_v19  ;;  %v116_v42 = vsel %vm105_vm0, %v92_v38, 0 }
  0x14   :  { %v2262_v21 = vsub.f32 %v107_v10, %v2254_v16  ;;  %v241_v23 = vand.u32 4294901760, %v240_v15  ;;  %364 = vmatpush.msra.mxu3 %v2238_v4  ;;  %v247_v24 = vand.u32 4294901760, %v246_v17  ;;  %v2266_v25 = vsub.f32 %v110_v11, %v2257_v18 }
  0x15   :  { %147 = vmatpush.msra.mxu0 %v2240_v5  ;;  %301 = vmatpush.msra.mxu2 %v234_v14  ;;  %v230_v26 = vsub.f32 %v228_v13, %v229_v20  ;;  %v236_v28 = vsub.f32 %v234_v14, %v235_v22  ;;  %v2290_v41 = vsub.f32 %v113_v19, %v2273_v31  ;;  %v2298_v45 = vand.u32 4294901760, %v116_v42 }
  0x16   :  { %v2270_v27 = vand.u32 4294901760, %v2262_v21  ;;  %v242_v29 = vsub.f32 %v240_v15, %v241_v23  ;;  %366 = vmatpush.msra.mxu3 %v2240_v5  ;;  %v248_v30 = vsub.f32 %v246_v17, %v247_v24  ;;  %v2279_v35 = vand.u32 4294901760, %v2266_v25 }
  0x17   :  { %149 = vmatpush.msra.mxu0 %v2245_v9  ;;  %v231_v32 = vand.u32 4294901760, %v230_v26  ;;  %304 = vmatpush.msra.mxu2 %v240_v15  ;;  %v237_v34 = vand.u32 4294901760, %v236_v28  ;;  %v2296_v44 = vand.u32 4294901760, %v2290_v41  ;;  %v2309_v48 = vsub.f32 %v116_v42, %v2298_v45 }
  0x18   :  { %v153_v33 = vsub.f32 %v2262_v21, %v2270_v27  ;;  %368 = vmatpush.msra.mxu3 %v2245_v9  ;;  %v243_v37 = vand.u32 4294901760, %v242_v29  ;;  %v249_v39 = vand.u32 4294901760, %v248_v30  ;;  %v161_v40 = vsub.f32 %v2266_v25, %v2279_v35  ;;  %v623_v30 = vld [vmem:[%s2918_s3] sm:$0xff] }
  0x19   :  { %433 = vmatpush.msrb.mxu0 %v229_v20  ;;  %232 = vmatpush.msra.mxu1 %v231_v32  ;;  %v169_v47 = vsub.f32 %v2290_v41, %v2296_v44  ;;  %v119_v49 = vsel %vm105_vm0, %v93_v46, 0  ;;  %v2316_v51 = vand.u32 4294901760, %v2309_v48  ;;  %v122_v56 = vsel %vm105_vm0, %v94_v53, 0  ;;  %v625_v20 = vld [vmem:[%s2918_s3 + $0x10] sm:$0xff] }
  0x1a   :  { %v2282_v36 = vand.u32 4294901760, %v153_v33  ;;  %307 = vmatpush.msra.mxu2 %v246_v17  ;;  %372 = vmatmul.f32.vlgmr.msra.gmra.mxu3 %v2270_v27  ;;  %v2293_v43 = vand.u32 4294901760, %v161_v40  ;;  %v2318_v52 = vand.u32 4294901760, %v119_v49  ;;  %v2336_v59 = vand.u32 4294901760, %v122_v56  ;;  %v626_v17 = vld [vmem:[%s2918_s3 + $0x18] sm:$0xff] }
  0x1b   :  { %310 = vmatmul.f32.vlgmr.msra.gmra.mxu2 %v2262_v21  ;;  %238 = vmatpush.msra.mxu1 %v237_v34  ;;  %v2313_v50 = vand.u32 4294901760, %v169_v47  ;;  %v177_v54 = vsub.f32 %v2309_v48, %v2316_v51  ;;  %v125_v63 = vsel %vm105_vm0, %v95_v60, 0  ;;  %v643_v19 = vand.u32 4294901760, %v626_v17 }
  0x1c   :  { %155 = vmatmul.f32.vlgmr.msra.gmra.mxu0 %v2282_v36  ;;  %v2328_v55 = vsub.f32 %v119_v49, %v2318_v52  ;;  %v2345_v62 = vsub.f32 %v122_v56, %v2336_v59  ;;  %v2353_v2 = vand.u32 4294901760, %v125_v63  ;;  %v649_v34 = vand.u32 4294901760, %v623_v30 }
  0x1d   :  { %437 = vmatpush.msrb.mxu0 %v235_v22  ;;  %244 = vmatpush.msra.mxu1 %v243_v37  ;;  %v2331_v57 = vand.u32 4294901760, %v177_v54  ;;  %v645_v22 = vand.u32 4294901760, %v625_v20 }
  0x1e   :  { %v2334_v58 = vand.u32 4294901760, %v2328_v55  ;;  %v2351_v1 = vand.u32 4294901760, %v2345_v62  ;;  %644 = vmatpush.msrb.mxu2 %v643_v19  ;;  %v747_v46 = vsub.f32 %v623_v30, %v649_v34 }
  0x1f   :  { %441 = vmatpush.msrb.mxu0 %v241_v23  ;;  %250 = vmatpush.msra.mxu1 %v249_v39  ;;  %v729_v23 = vsub.f32 %v626_v17, %v643_v19  ;;  %v735_v29 = vsub.f32 %v625_v20, %v645_v22 }
  0x20   :  { %252 = vmatmul.f32.vlgmr.msra.gmra.mxu1 %v2254_v16  ;;  %v185_v61 = vsub.f32 %v2328_v55, %v2334_v58  ;;  %646 = vmatpush.msrb.mxu2 %v645_v22  ;;  %v748_v53 = vand.u32 4294901760, %v747_v46 }
  0x21   :  { %445 = vmatpush.msrb.mxu0 %v247_v24  ;;  %492 = vmatpush.msrb.mxu1 %v2236_v3  ;;  %v96_v3 = vld [vmem:[#allocation2 + $0x38] sm:$0xff]  ;;  %v624_v24 = vld [vmem:[%s2918_s3 + $0x8] sm:$0xff]  ;;  %v730_v26 = vand.u32 4294901760, %v729_v23  ;;  %v736_v33 = vand.u32 4294901760, %v735_v29 }
  0x22   :  { %378 = vmatmul.f32.gmra.mxu3 %v2279_v35  ;;  %v2348_v0 = vand.u32 4294901760, %v185_v61  ;;  %v128_v6 = vsel %vm105_vm0, %v96_v3, 0  ;;  %v647_v28 = vand.u32 4294901760, %v624_v24  ;;  %v749_v60 = vsub.f32 %v747_v46, %v748_v53 }
  0x23   :  { %315 = vmatmul.f32.gmra.mxu2 %v2266_v25  ;;  %494 = vmatpush.msrb.mxu1 %v2238_v4  ;;  %v193_v4 = vsub.f32 %v2345_v62, %v2351_v1  ;;  %v731_v32 = vsub.f32 %v729_v23, %v730_v26  ;;  %v737_v40 = vsub.f32 %v735_v29, %v736_v33 }
  0x24   :  { %163 = vmatmul.f32.gmra.mxu0 %v2293_v43  ;;  %648 = vmatpush.msrb.mxu2 %v647_v28  ;;  %v741_v37 = vsub.f32 %v624_v24, %v647_v28  ;;  %v750_v61 = vand.u32 4294901760, %v749_v60 }
  0x25   :  { %496 = vmatpush.msrb.mxu1 %v2240_v5  ;;  %v2362_v5 = vsub.f32 %v125_v63, %v2353_v2  ;;  %v2365_v7 = vand.u32 4294901760, %v193_v4  ;;  %799 = vmatpush.msra.mxu0 %v729_v23  ;;  %v732_v39 = vand.u32 4294901760, %v731_v32  ;;  %v738_v47 = vand.u32 4294901760, %v737_v40 }
  0x26   :  { %650 = vmatpush.msrb.mxu2 %v649_v34  ;;  %v742_v42 = vand.u32 4294901760, %v741_v37 }
  0x27   :  { %498 = vmatpush.msrb.mxu1 %v2245_v9  ;;  %v2368_v8 = vand.u32 4294901760, %v2362_v5  ;;  %v2370_v9 = vand.u32 4294901760, %v128_v6  ;;  %802 = vmatpush.msra.mxu0 %v735_v29  ;;  %v2003_v29 = vld [vmem:[%s2917_s2] ss:$0 sm:$0xff] }
  0x28   :  { %256 = vmatmul.f32.gmra.mxu1 %v2257_v18  ;;  %733 = vmatpush.msrb.mxu3 %v732_v39  ;;  %v743_v49 = vsub.f32 %v741_v37, %v742_v42 }
  0x29   :  { %v201_v10 = vsub.f32 %v2362_v5, %v2368_v8  ;;  %v2379_v11 = vsub.f32 %v128_v6, %v2370_v9  ;;  %863 = vmatpush.msra.mxu1 %v643_v19  ;;  %805 = vmatpush.msra.mxu0 %v741_v37 }
  0x2a   :  { %384 = vmatmul.f32.gmra.mxu3 %v2296_v44  ;;  %934 = vmatpush.msra.mxu2 %v730_v26  ;;  %v744_v56 = vand.u32 4294901760, %v743_v49 }
  0x2b   :  { %320 = vmatmul.f32.gmra.mxu2 %v2290_v41  ;;  %v2381_v12 = vand.u32 4294901760, %v201_v10  ;;  %v2384_v13 = vand.u32 4294901760, %v2379_v11  ;;  %865 = vmatpush.msra.mxu1 %v645_v22 }
  0x2c   :  { %171 = vmatmul.f32.gmra.mxu0 %v2313_v50  ;;  %739 = vmatpush.msrb.mxu3 %v738_v47 }
  0x2d   :  { %v209_v14 = vsub.f32 %v2379_v11, %v2384_v13  ;;  %867 = vmatpush.msra.mxu1 %v647_v28  ;;  %808 = vmatpush.msra.mxu0 %v747_v46 }
  0x2e   :  { %938 = vmatpush.msra.mxu2 %v736_v33  ;;  %745 = vmatpush.msrb.mxu3 %v744_v56 }
  0x2f   :  { %v2392_v15 = vand.u32 4294901760, %v209_v14  ;;  %869 = vmatpush.msra.mxu1 %v649_v34 }
  0x30   :  { %260 = vmatmul.f32.gmra.mxu1 %v2273_v31  ;;  %942 = vmatpush.msra.mxu2 %v742_v42 }
  0x31   :  { %751 = vmatpush.msrb.mxu3 %v750_v61 }
  0x32   :  { %390 = vmatmul.f32.gmra.mxu3 %v2316_v51  ;;  %946 = vmatpush.msra.mxu2 %v748_v53 }
  0x33   :  { %325 = vmatmul.f32.gmra.mxu2 %v2309_v48  ;;  %993 = vmatpush.msra.mxu3 %v643_v19 }
  0x34   :  { %179 = vmatmul.f32.gmra.mxu0 %v2331_v57 }
  0x35   :  { %995 = vmatpush.msra.mxu3 %v645_v22 }
  0x37   :  { %997 = vmatpush.msra.mxu3 %v647_v28 }
  0x38   :  { %264 = vmatmul.f32.gmra.mxu1 %v2298_v45 }
  0x39   :  { %999 = vmatpush.msra.mxu3 %v649_v34 }
  0x3a   :  { %396 = vmatmul.f32.gmra.mxu3 %v2334_v58 }
  0x3b   :  { %330 = vmatmul.f32.gmra.mxu2 %v2328_v55 }
  0x3c   :  { %187 = vmatmul.f32.gmra.mxu0 %v2348_v0 }
  0x40   :  { %268 = vmatmul.f32.gmra.mxu1 %v2318_v52 }
  0x42   :  { %402 = vmatmul.f32.gmra.mxu3 %v2351_v1 }
  0x43   :  { %335 = vmatmul.f32.gmra.mxu2 %v2345_v62 }
  0x44   :  { %195 = vmatmul.f32.gmra.mxu0 %v2365_v7 }
  0x48   :  { %272 = vmatmul.f32.gmra.mxu1 %v2336_v59 }
  0x4a   :  { %408 = vmatmul.f32.gmra.mxu3 %v2368_v8 }
  0x4b   :  { %340 = vmatmul.f32.gmra.mxu2 %v2362_v5 }
  0x4c   :  { %203 = vmatmul.f32.gmra.mxu0 %v2381_v12 }
  0x50   :  { %276 = vmatmul.f32.gmra.mxu1 %v2353_v2 }
  0x52   :  { %414 = vmatmul.f32.gmra.mxu3 %v2384_v13 }
  0x53   :  { %345 = vmatmul.f32.gmra.mxu2 %v2379_v11 }
  0x54   :  { %211 = vmatmul.f32.gmra.mxu0 %v2392_v15 }
  0x58   :  { %280 = vmatmul.f32.gmra.mxu1 %v2370_v9 }
  0x5a   :  { %753 = vmatmul.f32.vlgmr.msrb.gmra.mxu3 %v2254_v16 }
  0x5b   :  { %656 = vmatmul.f32.vlgmr.msrb.gmra.mxu2 %v2282_v36 }
  0x5c   :  { %447 = vmatmul.f32.vlgmr.msrb.gmra.mxu0 %v2254_v16 }
  0x60   :  { %500 = vmatmul.f32.vlgmr.msrb.gmra.mxu1 %v2254_v16 }
  0x62   :  { %757 = vmatmul.f32.gmra.mxu3 %v2257_v18 }
  0x63   :  { %664 = vmatmul.f32.gmra.mxu2 %v2293_v43 }
  0x64   :  { %451 = vmatmul.f32.gmra.mxu0 %v2257_v18 }
  0x68   :  { %504 = vmatmul.f32.gmra.mxu1 %v2257_v18 }
  0x6a   :  { %761 = vmatmul.f32.gmra.mxu3 %v2273_v31 }
  0x6b   :  { %672 = vmatmul.f32.gmra.mxu2 %v2313_v50 }
  0x6c   :  { %455 = vmatmul.f32.gmra.mxu0 %v2273_v31 }
  0x70   :  { %508 = vmatmul.f32.gmra.mxu1 %v2273_v31 }
  0x72   :  { %765 = vmatmul.f32.gmra.mxu3 %v2298_v45 }
  0x73   :  { %680 = vmatmul.f32.gmra.mxu2 %v2331_v57 }
  0x74   :  { %459 = vmatmul.f32.gmra.mxu0 %v2298_v45 }
  0x78   :  { %512 = vmatmul.f32.gmra.mxu1 %v2298_v45 }
  0x7a   :  { %769 = vmatmul.f32.gmra.mxu3 %v2318_v52 }
  0x7b   :  { %688 = vmatmul.f32.gmra.mxu2 %v2348_v0 }
  0x7c   :  { %463 = vmatmul.f32.gmra.mxu0 %v2318_v52 }
  0x80   :  { %516 = vmatmul.f32.gmra.mxu1 %v2318_v52 }
  0x82   :  { %773 = vmatmul.f32.gmra.mxu3 %v2336_v59 }
  0x83   :  { %696 = vmatmul.f32.gmra.mxu2 %v2365_v7 }
  0x84   :  { %467 = vmatmul.f32.gmra.mxu0 %v2336_v59 }
  0x88   :  { %520 = vmatmul.f32.gmra.mxu1 %v2336_v59 }
  0x8a   :  { %777 = vmatmul.f32.gmra.mxu3 %v2353_v2 }
  0x8b   :  { %704 = vmatmul.f32.gmra.mxu2 %v2381_v12 }
  0x8c   :  { %471 = vmatmul.f32.gmra.mxu0 %v2353_v2 }
  0x90   :  { %524 = vmatmul.f32.gmra.mxu1 %v2353_v2 }
  0x92   :  { %781 = vmatmul.f32.gmra.mxu3 %v2370_v9 }
  0x93   :  { %712 = vmatmul.f32.gmra.mxu2 %v2392_v15 }
  0x94   :  { %475 = vmatmul.f32.gmra.mxu0 %v2370_v9 }
  0x98   :  { %528 = vmatmul.f32.gmra.mxu1 %v2370_v9 }
  0x99   :  { %v2426_v38 = vpop.f32.mrf.mxu0 }
  0x9a   :  { %1001 = vmatmul.f32.vlgmr.msra.gmra.mxu3 %v2254_v16  ;;  %v157_v34 = vadd.f32 %v2003_v29, %v2426_v38 }
  0x9b   :  { %948 = vmatmul.f32.vlgmr.msra.gmra.mxu2 %v2254_v16 }
  0x9c   :  { %811 = vmatmul.f32.vlgmr.msra.gmra.mxu0 %v2262_v21 }
  0x9d   :  { %v2430_v54 = vpop.f32.mrf.mxu1  ;;  %v2476_v57 = vpop.f32.mrf.mxu3 }
  0x9e   :  { %v254_v42 = vadd.f32 %v2430_v54, %v157_v34 }
  0xa0   :  { %873 = vmatmul.f32.vlgmr.msra.gmra.mxu1 %v2270_v27 }
  0xa1   :  { %v2433_v36 = vpop.f32.mrf.mxu0 }
  0xa2   :  { %1005 = vmatmul.f32.gmra.mxu3 %v2257_v18 }
  0xa3   :  { %952 = vmatmul.f32.gmra.mxu2 %v2257_v18 }
  0xa4   :  { %816 = vmatmul.f32.gmra.mxu0 %v2266_v25 }
  0xa5   :  { %v2438_v63 = vpop.f32.mrf.mxu1 }
  0xa8   :  { %879 = vmatmul.f32.gmra.mxu1 %v2279_v35 }
  0xa9   :  { %v2441_v21 = vpop.f32.mrf.mxu0 }
  0xaa   :  { %1009 = vmatmul.f32.gmra.mxu3 %v2273_v31 }
  0xab   :  { %956 = vmatmul.f32.gmra.mxu2 %v2273_v31  ;;  %v173_v31 = vadd.f32 %v2003_v29, %v2441_v21 }
  0xac   :  { %821 = vmatmul.f32.gmra.mxu0 %v2290_v41 }
  0xad   :  { %v2446_v27 = vpop.f32.mrf.mxu1 }
  0xae   :  { %v262_v46 = vadd.f32 %v2446_v27, %v173_v31 }
  0xb0   :  { %885 = vmatmul.f32.gmra.mxu1 %v2296_v44 }
  0xb1   :  { %v2449_v43 = vpop.f32.mrf.mxu0 }
  0xb2   :  { %1013 = vmatmul.f32.gmra.mxu3 %v2298_v45  ;;  %v181_v38 = vadd.f32 %v2003_v29, %v2449_v43 }
  0xb3   :  { %960 = vmatmul.f32.gmra.mxu2 %v2298_v45  ;;  %v165_v45 = vadd.f32 %v2003_v29, %v2433_v36 }
  0xb4   :  { %826 = vmatmul.f32.gmra.mxu0 %v2309_v48  ;;  %v2470_v48 = vpop.f32.mrf.mxu2 }
  0xb5   :  { %v2454_v25 = vpop.f32.mrf.mxu1  ;;  %v312_v61 = vadd.f32 %v2470_v48, %v254_v42 }
  0xb7   :  { %v374_v36 = vadd.f32 %v2476_v57, %v312_v61 }
  0xb8   :  { %891 = vmatmul.f32.gmra.mxu1 %v2316_v51 }
  0xb9   :  { %v2457_v35 = vpop.f32.mrf.mxu0 }
  0xba   :  { %v189_v32 = vadd.f32 %v2003_v29, %v2457_v35  ;;  %1017 = vmatmul.f32.gmra.mxu3 %v2318_v52 }
  0xbb   :  { %964 = vmatmul.f32.gmra.mxu2 %v2318_v52 }
  0xbc   :  { %831 = vmatmul.f32.gmra.mxu0 %v2328_v55 }
  0xbd   :  { %v2462_v41 = vpop.f32.mrf.mxu1 }
  0xbe   :  { %v270_v40 = vadd.f32 %v2462_v41, %v189_v32 }
  0xc0   :  { %897 = vmatmul.f32.gmra.mxu1 %v2334_v58  ;;  %v2483_v58 = vpop.f32.mrf.mxu2 }
  0xc1   :  { %v2465_v44 = vpop.f32.mrf.mxu0 }
  0xc2   :  { %v197_v49 = vadd.f32 %v2003_v29, %v2465_v44  ;;  %1021 = vmatmul.f32.gmra.mxu3 %v2336_v59 }
  0xc3   :  { %968 = vmatmul.f32.gmra.mxu2 %v2336_v59 }
  0xc4   :  { %836 = vmatmul.f32.gmra.mxu0 %v2345_v62  ;;  %v2489_v62 = vpop.f32.mrf.mxu3 }
  0xc5   :  { %v2472_v50 = vpop.f32.mrf.mxu1 }
  0xc6   :  { %v274_v21 = vadd.f32 %v2472_v50, %v197_v49 }
  0xc8   :  { %903 = vmatmul.f32.gmra.mxu1 %v2351_v1  ;;  %v321_v4 = vpop.f32.mrf.mxu2 }
  0xc9   :  { %v204_v51 = vpop.f32.mrf.mxu0  ;;  %v322_v54 = vadd.f32 %v321_v4, %v262_v46 }
  0xca   :  { %v205_v37 = vadd.f32 %v2003_v29, %v204_v51  ;;  %1025 = vmatmul.f32.gmra.mxu3 %v2353_v2 }
  0xcb   :  { %972 = vmatmul.f32.gmra.mxu2 %v2353_v2 }
  0xcc   :  { %841 = vmatmul.f32.gmra.mxu0 %v2362_v5  ;;  %v2500_v5 = vpop.f32.mrf.mxu3 }
  0xcd   :  { %v2480_v55 = vpop.f32.mrf.mxu1  ;;  %v386_v43 = vadd.f32 %v2500_v5, %v322_v54 }
  0xce   :  { %v278_v53 = vadd.f32 %v2480_v55, %v205_v37  ;;  %v258_v55 = vadd.f32 %v2438_v63, %v165_v45 }
  0xd0   :  { %909 = vmatmul.f32.gmra.mxu1 %v2368_v8  ;;  %v2507_v8 = vpop.f32.mrf.mxu2  ;;  %v317_v63 = vadd.f32 %v2483_v58, %v258_v55 }
  0xd1   :  { %v2485_v0 = vpop.f32.mrf.mxu0 }
  0xd2   :  { %v213_v51 = vadd.f32 %v2003_v29, %v2485_v0  ;;  %1029 = vmatmul.f32.gmra.mxu3 %v2370_v9 }
  0xd3   :  { %976 = vmatmul.f32.gmra.mxu2 %v2370_v9 }
  0xd4   :  { %846 = vmatmul.f32.gmra.mxu0 %v2379_v11  ;;  %v2512_v11 = vpop.f32.mrf.mxu3 }
  0xd5   :  { %v2492_v1 = vpop.f32.mrf.mxu1 }
  0xd6   :  { %v282_v50 = vadd.f32 %v2492_v1, %v213_v51 }
  0xd8   :  { %915 = vmatmul.f32.gmra.mxu1 %v2384_v13  ;;  %v1033_v13 = vld [vmem:[%s2926_s11] sm:$0xf]  ;;  %v331_v17 = vpop.f32.mrf.mxu2 }
  0xd9   :  { %v2495_v3 = vpop.f32.mrf.mxu0  ;;  %v1060_v14 = vsel %vm1058_vm1, %v1033_v13, 0  ;;  %v332_v60 = vadd.f32 %v331_v17, %v270_v40  ;;  %v266_v13 = vadd.f32 %v2454_v25, %v181_v38 }
  0xda   :  { %v1077_v15 = vand.u32 4294901760, %v1060_v14 }
  0xdb   :  { %v327_v25 = vadd.f32 %v2507_v8, %v266_v13 }
  0xdc   :  { %1078 = vmatpush.msrb.mxu0 %v1077_v15  ;;  %v1160_v16 = vsub.f32 %v1060_v14, %v1077_v15  ;;  %1273 = vmatpush.msrb.mxu3 %v1077_v15  ;;  %v397_v23 = vpop.f32.mrf.mxu3 }
  0xdd   :  { %v2502_v6 = vpop.f32.mrf.mxu1  ;;  %v398_v44 = vadd.f32 %v397_v23, %v332_v60  ;;  %v392_v58 = vadd.f32 %v2512_v11, %v327_v25 }
  0xde   :  { %v1161_v20 = vand.u32 4294901760, %v1160_v16  ;;  %1215 = vmatpush.msrb.mxu2 %v1160_v16 }
  0xe0   :  { %v1162_v24 = vsub.f32 %v1160_v16, %v1161_v20  ;;  %1341 = vmatpush.msra.mxu0 %v1161_v20  ;;  %v336_v18 = vpop.f32.mrf.mxu2 }
  0xe1   :  { %v2504_v7 = vpop.f32.mrf.mxu0  ;;  %v337_v48 = vadd.f32 %v336_v18, %v274_v21 }
  0xe2   :  { %v1163_v26 = vand.u32 4294901760, %v1162_v24 }
  0xe4   :  { %1164 = vmatpush.msrb.mxu1 %v1163_v26  ;;  %v403_v33 = vpop.f32.mrf.mxu3  ;;  %v380_v26 = vadd.f32 %v2489_v62, %v317_v63 }
  0xe5   :  { %v2510_v10 = vpop.f32.mrf.mxu1 }
  0xe6   :  { %1391 = vmatpush.msra.mxu1 %v1077_v15  ;;  %v449_v15 = vadd.f32 %v2495_v3, %v374_v36  ;;  %v404_v3 = vadd.f32 %v403_v33, %v337_v48  ;;  %v453_v34 = vadd.f32 %v2504_v7, %v380_v26 }
  0xe8   :  { %v341_v56 = vpop.f32.mrf.mxu2  ;;  %v502_v0 = vadd.f32 %v2502_v6, %v449_v15  ;;  %v506_v11 = vadd.f32 %v2510_v10, %v453_v34 }
  0xe9   :  { %v2514_v12 = vpop.f32.mrf.mxu0  ;;  %v342_v27 = vadd.f32 %v341_v56, %v278_v53 }
  0xea   :  { %v457_v17 = vadd.f32 %v2514_v12, %v386_v43  ;;  %v533_v18 = vsel %vm532_vm2, %v502_v0, -inf  ;;  %v540_v38 = vsel %vm532_vm2, %v506_v11, -inf }
  0xec   :  { %v409_v35 = vpop.f32.mrf.mxu3 }
  0xed   :  { %v2521_v19 = vpop.f32.mrf.mxu1  ;;  %v410_v4 = vadd.f32 %v409_v35, %v342_v27 }
  0xee   :  { %v510_v5 = vadd.f32 %v2521_v19, %v457_v17 }
  0xf0   :  { %v346_v57 = vpop.f32.mrf.mxu2  ;;  %v534_v59 = vsel %vm532_vm2, %v510_v5, -inf }
  0xf1   :  { %v2523_v22 = vpop.f32.mrf.mxu0  ;;  %v347_v23 = vadd.f32 %v346_v57, %v282_v50 }
  0xf2   :  { %v461_v31 = vadd.f32 %v2523_v22, %v392_v58 }
  0xf4   :  { %v415_v8 = vpop.f32.mrf.mxu3 }
  0xf5   :  { %v2527_v28 = vpop.f32.mrf.mxu1  ;;  %v416_v33 = vadd.f32 %v415_v8, %v347_v23 }
  0xf8   :  { %v2585_v15 = vpop.f32.mrf.mxu2 }
  0xf9   :  { %v464_v30 = vpop.f32.mrf.mxu0 }
  0xfa   :  { %v465_v52 = vadd.f32 %v464_v30, %v398_v44 }
  0xfc   :  { %v2591_v57 = vpop.f32.mrf.mxu3 }
  0xfd   :  { %v517_v39 = vpop.f32.mrf.mxu1 }
  0xfe   :  { %v518_v16 = vadd.f32 %v517_v39, %v465_v52  ;;  %v514_v39 = vadd.f32 %v2527_v28, %v461_v31 }
 0x100   :  { %v535_v12 = vsel %vm532_vm2, %v518_v16, -inf  ;;  %v541_v2 = vsel %vm532_vm2, %v514_v39, -inf }
 0x101   :  { %v468_v47 = vpop.f32.mrf.mxu0  ;;  %v536_v29 = vmax.f32 %v533_v18, %v535_v12 }
 0x102   :  { %v469_v6 = vadd.f32 %v468_v47, %v404_v3 }
 0x105   :  { %v521_v41 = vpop.f32.mrf.mxu1 }
 0x106   :  { %v522_v37 = vadd.f32 %v521_v41, %v469_v6  ;;  %v2608_v6 = vpop.f32.mrf.mxu3 }
 0x108   :  { %v542_v7 = vsel %vm532_vm2, %v522_v37, -inf }
 0x109   :  { %v472_v14 = vpop.f32.mrf.mxu0  ;;  %v543_v28 = vmax.f32 %v540_v38, %v542_v7 }
 0x10a   :  { %v473_v20 = vadd.f32 %v472_v14, %v410_v4 }
 0x10d   :  { %v525_v1 = vpop.f32.mrf.mxu1 }
 0x10e   :  { %v526_v24 = vadd.f32 %v525_v1, %v473_v20 }
 0x110   :  { %v537_v19 = vsel %vm532_vm2, %v526_v24, -inf }
 0x111   :  { %v538_v30 = vmax.f32 %v534_v59, %v537_v19  ;;  %v476_v32 = vpop.f32.mrf.mxu0 }
 0x112   :  { %v477_v40 = vadd.f32 %v476_v32, %v416_v33 }
 0x113   :  { %v539_v62 = vmax.f32 %v536_v29, %v538_v30 }
 0x115   :  { %v547_v42 = vsub.f32 %v502_v0, %v539_v62  ;;  %v549_v46 = vsub.f32 %v510_v5, %v539_v62  ;;  %v551_v47 = vsub.f32 %v518_v16, %v539_v62  ;;  %v553_v49 = vsub.f32 %v526_v24, %v539_v62  ;;  %v529_v53 = vpop.f32.mrf.mxu1  ;;  %v2602_v24 = vpop.f32.mrf.mxu2 }
 0x116   :  { %v530_v56 = vadd.f32 %v529_v53, %v477_v40 }
 0x117   :  { %v555_v22 = vmul.f32 1.442695, %v547_v42  ;;  %v559_v60 = vmul.f32 1.442695, %v549_v46  ;;  %v563_v45 = vmul.f32 1.442695, %v551_v47 }
 0x118   :  { %v567_v61 = vmul.f32 1.442695, %v553_v49  ;;  %v544_v10 = vsel %vm532_vm2, %v530_v56, -inf }
 0x119   :  { %2009 = vpow2.f32 %v555_v22  ;;  %v545_v54 = vmax.f32 %v541_v2, %v544_v10 }
 0x11a   :  { %2011 = vpow2.f32 %v559_v60 }
 0x11b   :  { %2013 = vpow2.f32 %v563_v45  ;;  %v546_v21 = vmax.f32 %v543_v28, %v545_v54 }
 0x11c   :  { %2015 = vpow2.f32 %v567_v61 }
 0x11d   :  { %v548_v27 = vsub.f32 %v506_v11, %v546_v21  ;;  %v550_v35 = vsub.f32 %v514_v39, %v546_v21  ;;  %v552_v41 = vsub.f32 %v522_v37, %v546_v21  ;;  %v554_v44 = vsub.f32 %v530_v56, %v546_v21  ;;  %v2610_v32 = vpop.f32.mrf.mxu2  ;;  %v2612_v11 = vpop.f32.mrf.mxu3 }
 0x11f   :  { %v2010_v51 = vpop.eup %2009  ;;  %v557_v55 = vmul.f32 1.442695, %v548_v27  ;;  %v561_v13 = vmul.f32 1.442695, %v550_v35  ;;  %v565_v36 = vmul.f32 1.442695, %v552_v41 }
 0x120   :  { %v2012_v43 = vpop.eup %2011  ;;  %v571_v52 = vsel %vm532_vm2, %v2010_v51, 0.0  ;;  %v569_v14 = vmul.f32 1.442695, %v554_v44 }
 0x121   :  { %v2580_v48 = vpop.eup %2013  ;;  %v572_v4 = vsel %vm532_vm2, %v2012_v43, 0.0  ;;  %2017 = vpow2.f32 %v557_v55 }
 0x122   :  { %v2583_v50 = vpop.eup %2015  ;;  %v573_v9 = vadd.f32 %v572_v4, %v571_v52  ;;  %2019 = vpow2.f32 %v561_v13  ;;  %v574_v17 = vsel %vm532_vm2, %v2580_v48, 0.0 }
 0x123   :  { %2021 = vpow2.f32 %v565_v36  ;;  %v576_v63 = vsel %vm532_vm2, %v2583_v50, 0.0 }
 0x124   :  { %v575_v16 = vadd.f32 %v574_v17, %v573_v9  ;;  %2023 = vpow2.f32 %v569_v14 }
 0x125   :  { %v2617_v53 = vpop.f32.mrf.mxu2  ;;  %v2625_v10 = vpop.f32.mrf.mxu3 }
 0x126   :  { %v577_v25 = vadd.f32 %v576_v63, %v575_v16 }
 0x127   :  { %v2018_v0 = vpop.eup %2017 }
 0x128   :  { %v2593_v5 = vpop.eup %2019  ;;  %2025 = vrcp.f32 %v577_v25  ;;  %v578_v20 = vsel %vm532_vm2, %v2018_v0, 0.0  ;;  %v596_v30 = vand.u32 2147483648, %v577_v25  ;;  %v594_v34 = vand.u32 2147483647, %v577_v25 }
 0x129   :  { %v2596_v1 = vpop.eup %2021  ;;  %v579_v3 = vsel %vm532_vm2, %v2593_v5, 0.0  ;;  %vm590_vm4 = vweird.f32 %v577_v25 }
 0x12a   :  { %v2600_v23 = vpop.eup %2023  ;;  %v580_v12 = vadd.f32 %v579_v3, %v578_v20  ;;  %v581_v26 = vsel %vm532_vm2, %v2596_v1, 0.0  ;;  %v597_v62 = vor.u32 1.1754944e-38, %v596_v30  ;;  %vm595_vm6 = vcmp.eq.f32.partialorder %v594_v34, 8.507059e+37 }
 0x12b   :  { %v583_v8 = vsel %vm532_vm2, %v2600_v23, 0.0 }
 0x12c   :  { %v582_v58 = vadd.f32 %v581_v26, %v580_v12 }
 0x12d   :  { %v2631_v44 = vpop.f32.mrf.mxu2  ;;  %v2642_v14 = vpop.f32.mrf.mxu3 }
 0x12e   :  { %v2026_v18 = vpop.eup %2025  ;;  %v584_v59 = vadd.f32 %v583_v8, %v582_v58 }
 0x12f   :  { %v586_v19 = vmul.f32 %v2026_v18, %v577_v25  ;;  %vm591_vm3 = vweird.f32 %v2026_v18 }
 0x130   :  { %2027 = vrcp.f32 %v584_v59  ;;  %vm592_vm5 = vmor %vm590_vm4, %vm591_vm3  ;;  %v611_v49 = vand.u32 2147483648, %v584_v59  ;;  %v609_v22 = vand.u32 2147483647, %v584_v59  ;;  %vm605_vm8 = vweird.f32 %v584_v59 }
 0x131   :  { %v587_v29 = vsub.f32 1.0, %v586_v19 }
 0x132   :  { %v612_v61 = vor.u32 1.1754944e-38, %v611_v49  ;;  %vm610_vm10 = vcmp.eq.f32.partialorder %v609_v22, 8.507059e+37 }
 0x133   :  { %v588_v33 = vmul.f32 %v2026_v18, %v587_v29 }
 0x135   :  { %v589_v31 = vadd.f32 %v2026_v18, %v588_v33  ;;  %v2646_v63 = vpop.f32.mrf.mxu2  ;;  %v2653_v3 = vpop.f32.mrf.mxu3 }
 0x136   :  { %v2028_v37 = vpop.eup %2027 }
 0x137   :  { %v601_v39 = vmul.f32 %v2028_v37, %v584_v59  ;;  %v593_v40 = vsel %vm592_vm5, %v2026_v18, %v589_v31  ;;  %vm606_vm7 = vweird.f32 %v2028_v37 }
 0x138   :  { %v2614_v42 = vsel %vm595_vm6, %v597_v62, %v593_v40  ;;  %vm607_vm9 = vmor %vm605_vm8, %vm606_vm7 }
 0x139   :  { %v615_v46 = vmul.f32 %v2010_v51, %v2614_v42  ;;  %v602_v47 = vsub.f32 1.0, %v601_v39  ;;  %v617_v38 = vmul.f32 %v2012_v43, %v2614_v42  ;;  %v619_v20 = vmul.f32 %v2580_v48, %v2614_v42 }
 0x13b   :  { %v1035_v7 = vsel %vm532_vm2, %v615_v46, 0  ;;  %v603_v56 = vmul.f32 %v2028_v37, %v602_v47  ;;  %v1041_v35 = vsel %vm532_vm2, %v617_v38, 0  ;;  %v1047_v58 = vsel %vm532_vm2, %v619_v20, 0  ;;  %v2679_v47 = vpop.f32.mrf.mxu0 }
 0x13c   :  { %v2620_v60 = vand.u32 4294901760, %v1035_v7  ;;  %v2636_v36 = vand.u32 4294901760, %v1041_v35  ;;  %v2659_v19 = vand.u32 4294901760, %v1047_v58 }
 0x13d   :  { %v604_v45 = vadd.f32 %v2028_v37, %v603_v56  ;;  %v2657_v8 = vpop.f32.mrf.mxu2  ;;  %v2664_v29 = vpop.f32.mrf.mxu3 }
 0x13e   :  { %1166 = vmatmul.f32.vlgmr.msrb.gmra.mxu1 %v2620_v60  ;;  %v1080_v2 = vsub.f32 %v1035_v7, %v2620_v60  ;;  %v1096_v9 = vsub.f32 %v1041_v35, %v2636_v36  ;;  %v1112_v33 = vsub.f32 %v1047_v58, %v2659_v19 }
 0x13f   :  { %v608_v28 = vsel %vm607_vm9, %v2028_v37, %v604_v45  ;;  %v2670_v37 = vpop.f32.mrf.mxu1 }
 0x140   :  { %1218 = vmatmul.f32.vlgmr.msrb.gmra.mxu2 %v1080_v2  ;;  %v1081_v54 = vand.u32 4294901760, %v1080_v2  ;;  %v2627_v21 = vsel %vm610_vm10, %v612_v61, %v608_v28  ;;  %v1113_v39 = vand.u32 4294901760, %v1112_v33 }
 0x141   :  { %v616_v27 = vmul.f32 %v2018_v0, %v2627_v21  ;;  %v618_v43 = vmul.f32 %v2593_v5, %v2627_v21  ;;  %v1097_v0 = vand.u32 4294901760, %v1096_v9  ;;  %v620_v48 = vmul.f32 %v2596_v1, %v2627_v21 }
 0x142   :  { %1277 = vmatmul.f32.vlgmr.msrb.gmra.mxu3 %v1081_v54  ;;  %v1082_v41 = vsub.f32 %v1080_v2, %v1081_v54  ;;  %v621_v1 = vmul.f32 %v2583_v50, %v2614_v42  ;;  %v1114_v49 = vsub.f32 %v1112_v33, %v1113_v39  ;;  %v2692_v2 = vld [vmem:[%s2919_s4] ss:$0 sm:$0xff]  ;;  %v622_v61 = vmul.f32 %v2600_v23, %v2627_v21 }
 0x143   :  { %v1038_v51 = vsel %vm532_vm2, %v616_v27, 0  ;;  %v1044_v17 = vsel %vm532_vm2, %v618_v43, 0  ;;  %v1098_v12 = vsub.f32 %v1096_v9, %v1097_v0  ;;  %v1050_v34 = vsel %vm532_vm2, %v620_v48, 0  ;;  %v2699_v54 = vpop.f32.mrf.mxu0 }
 0x144   :  { %v1083_v55 = vand.u32 4294901760, %v1082_v41  ;;  %v2634_v13 = vand.u32 4294901760, %v1038_v51  ;;  %v2648_v5 = vand.u32 4294901760, %v1044_v17  ;;  %v2672_v40 = vand.u32 4294901760, %v1050_v34 }
 0x145   :  { %v1099_v18 = vand.u32 4294901760, %v1098_v12  ;;  %v2668_v31 = vpop.f32.mrf.mxu2  ;;  %v2677_v46 = vpop.f32.mrf.mxu3  ;;  %v1053_v56 = vsel %vm532_vm2, %v621_v1, 0  ;;  %v1115_v38 = vand.u32 4294901760, %v1114_v49  ;;  %v674_v27 = vadd.f32 %v2692_v2, %v2610_v32 }
 0x146   :  { %1084 = vmatmul.f32.vlgmr.msrb.gmra.mxu0 %v1083_v55  ;;  %1170 = vmatmul.f32.gmra.mxu1 %v2634_v13  ;;  %v1088_v52 = vsub.f32 %v1038_v51, %v2634_v13  ;;  %v1104_v26 = vsub.f32 %v1044_v17, %v2648_v5  ;;  %v1120_v7 = vsub.f32 %v1050_v34, %v2672_v40  ;;  %v2687_v42 = vand.u32 4294901760, %v1053_v56 }
 0x147   :  { %v2683_v22 = vpop.f32.mrf.mxu1  ;;  %v1056_v51 = vsel %vm532_vm2, %v622_v61, 0  ;;  %v763_v23 = vadd.f32 %v2612_v11, %v674_v27  ;;  %v682_v17 = vadd.f32 %v2692_v2, %v2617_v53  ;;  %v690_v53 = vadd.f32 %v2692_v2, %v2631_v44 }
 0x148   :  { %1223 = vmatmul.f32.gmra.mxu2 %v1088_v52  ;;  %v1089_v4 = vand.u32 4294901760, %v1088_v52  ;;  %v1105_v59 = vand.u32 4294901760, %v1104_v26  ;;  %v1121_v50 = vand.u32 4294901760, %v1120_v7  ;;  %v1128_v41 = vsub.f32 %v1053_v56, %v2687_v42 }
 0x149   :  { %v771_v49 = vadd.f32 %v2642_v14, %v690_v53  ;;  %v698_v44 = vadd.f32 %v2692_v2, %v2646_v63 }
 0x14a   :  { %1283 = vmatmul.f32.gmra.mxu3 %v1089_v4  ;;  %v1090_v16 = vsub.f32 %v1088_v52, %v1089_v4  ;;  %v1106_v30 = vsub.f32 %v1104_v26, %v1105_v59  ;;  %v1122_v35 = vsub.f32 %v1120_v7, %v1121_v50  ;;  %v1129_v52 = vand.u32 4294901760, %v1128_v41 }
 0x14b   :  { %v2708_v4 = vand.u32 4294901760, %v1056_v51 }
 0x14c   :  { %v1091_v25 = vand.u32 4294901760, %v1090_v16  ;;  %v1107_v62 = vand.u32 4294901760, %v1106_v30  ;;  %v1123_v21 = vand.u32 4294901760, %v1122_v35 }
 0x14d   :  { %v2685_v45 = vpop.f32.mrf.mxu2  ;;  %v2697_v28 = vpop.f32.mrf.mxu3 }
 0x14e   :  { %1092 = vmatmul.f32.gmra.mxu0 %v1091_v25  ;;  %1174 = vmatmul.f32.gmra.mxu1 %v2636_v36  ;;  %v1130_v25 = vsub.f32 %v1128_v41, %v1129_v52 }
 0x14f   :  { %v886_v55 = vpop.f32.mrf.mxu1 }
 0x150   :  { %1228 = vmatmul.f32.gmra.mxu2 %v1096_v9  ;;  %v822_v9 = vpop.f32.mrf.mxu0 }
 0x151   :  { %v823_v16 = vadd.f32 %v822_v9, %v763_v23 }
 0x152   :  { %1289 = vmatmul.f32.gmra.mxu3 %v1097_v0  ;;  %v1136_v0 = vsub.f32 %v1056_v51, %v2708_v4  ;;  %v775_v51 = vadd.f32 %v2653_v3, %v698_v44 }
 0x153   :  { %v887_v20 = vadd.f32 %v886_v55, %v823_v16 }
 0x155   :  { %v2705_v43 = vpop.f32.mrf.mxu2  ;;  %v2711_v32 = vpop.f32.mrf.mxu3 }
 0x156   :  { %1100 = vmatmul.f32.gmra.mxu0 %v1099_v18  ;;  %1178 = vmatmul.f32.gmra.mxu1 %v2648_v5  ;;  %v1131_v18 = vand.u32 4294901760, %v1130_v25 }
 0x157   :  { %v892_v11 = vpop.f32.mrf.mxu1 }
 0x158   :  { %1233 = vmatmul.f32.gmra.mxu2 %v1104_v26  ;;  %v767_v26 = vadd.f32 %v2625_v10, %v682_v17  ;;  %v827_v30 = vpop.f32.mrf.mxu0 }
 0x15a   :  { %1295 = vmatmul.f32.gmra.mxu3 %v1105_v59  ;;  %v1137_v59 = vand.u32 4294901760, %v1136_v0  ;;  %v828_v34 = vadd.f32 %v827_v30, %v767_v26 }
 0x15d   :  { %v957_v12 = vpop.f32.mrf.mxu2  ;;  %v1010_v48 = vpop.f32.mrf.mxu3 }
 0x15e   :  { %1108 = vmatmul.f32.gmra.mxu0 %v1107_v62  ;;  %1182 = vmatmul.f32.gmra.mxu1 %v2659_v19  ;;  %v958_v58 = vadd.f32 %v957_v12, %v887_v20  ;;  %v1138_v62 = vsub.f32 %v1136_v0, %v1137_v59 }
 0x15f   :  { %v898_v1 = vpop.f32.mrf.mxu1 }
 0x160   :  { %1238 = vmatmul.f32.gmra.mxu2 %v1112_v33  ;;  %v2720_v33 = vadd.f32 %v1010_v48, %v958_v58  ;;  %v1139_v56 = vand.u32 4294901760, %v1138_v62 }
 0x162   :  { %1301 = vmatmul.f32.gmra.mxu3 %v1113_v39  ;;  %v893_v39 = vadd.f32 %v892_v11, %v828_v34  ;;  %v714_v11 = vadd.f32 %v2692_v2, %v2668_v31 }
 0x165   :  { %v961_v10 = vpop.f32.mrf.mxu2 }
 0x166   :  { %1116 = vmatmul.f32.gmra.mxu0 %v1115_v38  ;;  %1186 = vmatmul.f32.gmra.mxu1 %v2672_v40  ;;  %v1014_v38 = vpop.f32.mrf.mxu3 }
 0x167   :  { %v904_v55 = vpop.f32.mrf.mxu1 }
 0x168   :  { %1243 = vmatmul.f32.gmra.mxu2 %v1120_v7  ;;  %v962_v7 = vadd.f32 %v961_v10, %v893_v39 }
 0x16a   :  { %1307 = vmatmul.f32.gmra.mxu3 %v1121_v50  ;;  %v832_v50 = vpop.f32.mrf.mxu0  ;;  %v2726_v61 = vadd.f32 %v1014_v38, %v962_v7 }
 0x16b   :  { %v833_v27 = vadd.f32 %v832_v50, %v771_v49 }
 0x16d   :  { %v899_v35 = vadd.f32 %v898_v1, %v833_v27 }
 0x16e   :  { %1124 = vmatmul.f32.gmra.mxu0 %v1123_v21  ;;  %1190 = vmatmul.f32.gmra.mxu1 %v2687_v42  ;;  %v1018_v14 = vpop.f32.mrf.mxu3 }
 0x16f   :  { %v910_v3 = vpop.f32.mrf.mxu1 }
 0x170   :  { %1248 = vmatmul.f32.gmra.mxu2 %v1128_v41  ;;  %v965_v41 = vpop.f32.mrf.mxu2 }
 0x171   :  { %v966_v23 = vadd.f32 %v965_v41, %v899_v35 }
 0x172   :  { %1313 = vmatmul.f32.gmra.mxu3 %v1129_v52  ;;  %v837_v21 = vpop.f32.mrf.mxu0  ;;  %v706_v52 = vadd.f32 %v2692_v2, %v2657_v8 }
 0x173   :  { %v2733_v9 = vadd.f32 %v1018_v14, %v966_v23  ;;  %v838_v63 = vadd.f32 %v837_v21, %v775_v51  ;;  %v1450_v51 = vld [vmem:[#allocation5 + $0x18] sm:$0xff] }
 0x174   :  { %v779_v25 = vadd.f32 %v2664_v29, %v706_v52  ;;  %v2764_v23 = vand.u32 4294901760, %v1450_v51 }
 0x175   :  { %v905_v17 = vadd.f32 %v904_v55, %v838_v63 }
 0x176   :  { %1132 = vmatmul.f32.gmra.mxu0 %v1131_v18  ;;  %1194 = vmatmul.f32.gmra.mxu1 %v2708_v4  ;;  %v783_v18 = vadd.f32 %v2677_v46, %v714_v11  ;;  %v2770_v21 = vsub.f32 %v1450_v51, %v2764_v23 }
 0x177   :  { %v916_v53 = vpop.f32.mrf.mxu1  ;;  %1474 = vmatpush.msra.mxu2 %v2764_v23 }
 0x178   :  { %1253 = vmatmul.f32.gmra.mxu2 %v1136_v0  ;;  %v969_v16 = vpop.f32.mrf.mxu2  ;;  %v1512_v63 = vand.u32 4294901760, %v2770_v21 }
 0x179   :  { %v970_v0 = vadd.f32 %v969_v16, %v905_v17 }
 0x17a   :  { %1319 = vmatmul.f32.gmra.mxu3 %v1137_v59  ;;  %v842_v20 = vpop.f32.mrf.mxu0  ;;  %v1513_v17 = vsub.f32 %v2770_v21, %v1512_v63 }
 0x17b   :  { %v843_v8 = vadd.f32 %v842_v20, %v779_v25 }
 0x17d   :  { %v911_v26 = vadd.f32 %v910_v3, %v843_v8  ;;  %v1514_v3 = vand.u32 4294901760, %v1513_v17  ;;  %v1449_v8 = vld [vmem:[#allocation5 + $0x10] sm:$0xff] }
 0x17e   :  { %1140 = vmatmul.f32.gmra.mxu0 %v1139_v56  ;;  %1393 = vmatmul.f32.vlgmr.msra.gmra.mxu1 %v2620_v60 }
 0x17f   :  { %1515 = vmatpush.msra.mxu3 %v1514_v3 }
 0x180   :  { %v973_v58 = vpop.f32.mrf.mxu2 }
 0x181   :  { %v974_v59 = vadd.f32 %v973_v58, %v911_v26  ;;  %v2782_v26 = vand.u32 4294901760, %v1449_v8 }
 0x182   :  { %v847_v29 = vpop.f32.mrf.mxu0 }
 0x183   :  { %v848_v30 = vadd.f32 %v847_v29, %v783_v18  ;;  %1476 = vmatpush.msra.mxu2 %v2782_v26  ;;  %v2786_v18 = vsub.f32 %v1449_v8, %v2782_v26 }
 0x185   :  { %v917_v34 = vadd.f32 %v916_v53, %v848_v30 }
 0x186   :  { %1343 = vmatmul.f32.vlgmr.msra.gmra.mxu0 %v2620_v60  ;;  %1397 = vmatmul.f32.gmra.mxu1 %v2634_v13  ;;  %v1022_v60 = vpop.f32.mrf.mxu3 }
 0x187   :  { %v2740_v12 = vadd.f32 %v1022_v60, %v970_v0 }
 0x188   :  { %v977_v31 = vpop.f32.mrf.mxu2 }
 0x189   :  { %v978_v62 = vadd.f32 %v977_v31, %v917_v34 }
 0x18e   :  { %1347 = vmatmul.f32.gmra.mxu0 %v2634_v13  ;;  %1401 = vmatmul.f32.gmra.mxu1 %v2636_v36  ;;  %v1026_v13 = vpop.f32.mrf.mxu3 }
 0x18f   :  { %v2745_v48 = vadd.f32 %v1026_v13, %v974_v59  ;;  %v658_v59 = vadd.f32 %v2692_v2, %v2585_v15  ;;  %v1518_v13 = vand.u32 4294901760, %v2786_v18 }
 0x191   :  { %v1519_v30 = vsub.f32 %v2786_v18, %v1518_v13  ;;  %v755_v53 = vadd.f32 %v2591_v57, %v658_v59 }
 0x196   :  { %1351 = vmatmul.f32.gmra.mxu0 %v2636_v36  ;;  %1405 = vmatmul.f32.gmra.mxu1 %v2648_v5  ;;  %v1030_v39 = vpop.f32.mrf.mxu3 }
 0x197   :  { %v2749_v46 = vadd.f32 %v1030_v39, %v978_v62  ;;  %v1520_v62 = vand.u32 4294901760, %v1519_v30  ;;  %v813_v39 = vadd.f32 %v2679_v47, %v755_v53  ;;  %v1447_v30 = vld [vmem:[#allocation5] sm:$0xff] }
 0x199   :  { %1521 = vmatpush.msra.mxu3 %v1520_v62 }
 0x19e   :  { %1355 = vmatmul.f32.gmra.mxu0 %v2648_v5  ;;  %1409 = vmatmul.f32.gmra.mxu1 %v2659_v19 }
 0x1a6   :  { %1359 = vmatmul.f32.gmra.mxu0 %v2659_v19  ;;  %1413 = vmatmul.f32.gmra.mxu1 %v2672_v40 }
 0x1ae   :  { %1363 = vmatmul.f32.gmra.mxu0 %v2672_v40  ;;  %1417 = vmatmul.f32.gmra.mxu1 %v2687_v42 }
 0x1b6   :  { %1367 = vmatmul.f32.gmra.mxu0 %v2687_v42  ;;  %1421 = vmatmul.f32.gmra.mxu1 %v2708_v4 }
 0x1bb   :  { %v1167_v36 = vpop.f32.mrf.mxu1 }
 0x1be   :  { %1371 = vmatmul.f32.gmra.mxu0 %v2708_v4 }
 0x1c3   :  { %v1085_v5 = vpop.f32.mrf.mxu0  ;;  %v1171_v1 = vpop.f32.mrf.mxu1 }
 0x1c4   :  { %v1168_v10 = vadd.f32 %v1167_v36, %v1085_v5  ;;  %v1219_v52 = vpop.f32.mrf.mxu2  ;;  %v666_v5 = vadd.f32 %v2692_v2, %v2602_v24 }
 0x1c5   :  { %v1278_v16 = vpop.f32.mrf.mxu3 }
 0x1c6   :  { %v1220_v15 = vadd.f32 %v1219_v52, %v1168_v10 }
 0x1cb   :  { %v1093_v49 = vpop.f32.mrf.mxu0  ;;  %v1175_v7 = vpop.f32.mrf.mxu1 }
 0x1cc   :  { %v1172_v56 = vadd.f32 %v1171_v1, %v1093_v49  ;;  %v1224_v60 = vpop.f32.mrf.mxu2  ;;  %v875_v1 = vadd.f32 %v2670_v37, %v813_v39 }
 0x1cd   :  { %v1284_v58 = vpop.f32.mrf.mxu3 }
 0x1ce   :  { %v950_v24 = vadd.f32 %v2685_v45, %v875_v1  ;;  %v1225_v2 = vadd.f32 %v1224_v60, %v1172_v56 }
 0x1d0   :  { %v1003_v52 = vadd.f32 %v2697_v28, %v950_v24  ;;  %v1285_v3 = vadd.f32 %v1284_v58, %v1225_v2  ;;  %v2817_v28 = vand.u32 4294901760, %v1447_v30 }
 0x1d3   :  { %v1101_v19 = vpop.f32.mrf.mxu0  ;;  %v1179_v38 = vpop.f32.mrf.mxu1 }
 0x1d4   :  { %v1176_v50 = vadd.f32 %v1175_v7, %v1101_v19  ;;  %v1229_v29 = vpop.f32.mrf.mxu2  ;;  %v1448_v19 = vld [vmem:[#allocation5 + $0x8] sm:$0xff] }
 0x1d5   :  { %v1290_v36 = vpop.f32.mrf.mxu3  ;;  %v2800_v57 = vand.u32 4294901760, %v1448_v19 }
 0x1d7   :  { %1478 = vmatpush.msra.mxu2 %v2800_v57  ;;  %v2804_v47 = vsub.f32 %v1448_v19, %v2800_v57 }
 0x1d9   :  { %v1524_v10 = vand.u32 4294901760, %v2804_v47  ;;  %1480 = vmatpush.msra.mxu2 %v2817_v28 }
 0x1db   :  { %v1109_v44 = vpop.f32.mrf.mxu0  ;;  %v1183_v40 = vpop.f32.mrf.mxu1  ;;  %1557 = vmatpush.msrb.mxu2 %v2770_v21 }
 0x1dc   :  { %v2758_v27 = vadd.f32 %v1179_v38, %v1109_v44  ;;  %v759_v38 = vadd.f32 %v2608_v6, %v666_v5  ;;  %v1279_v44 = vadd.f32 %v1278_v16, %v1220_v15 }
 0x1dd   :  { %v1296_v51 = vpop.f32.mrf.mxu3  ;;  %1560 = vmatpush.msrb.mxu2 %v2786_v18 }
 0x1de   :  { %v818_v37 = vadd.f32 %v2699_v54, %v759_v38 }
 0x1df   :  { %1563 = vmatpush.msrb.mxu2 %v2804_v47 }
 0x1e0   :  { %v881_v16 = vadd.f32 %v2683_v22, %v818_v37 }
 0x1e2   :  { %v954_v53 = vadd.f32 %v2705_v43, %v881_v16 }
 0x1e3   :  { %v1117_v35 = vpop.f32.mrf.mxu0  ;;  %v1187_v42 = vpop.f32.mrf.mxu1 }
 0x1e4   :  { %v2760_v41 = vadd.f32 %v1183_v40, %v1117_v35  ;;  %v1234_v40 = vpop.f32.mrf.mxu2  ;;  %v1230_v35 = vadd.f32 %v1229_v29, %v1176_v50  ;;  %v1525_v50 = vsub.f32 %v2804_v47, %v1524_v10  ;;  %v1007_v43 = vadd.f32 %v2711_v32, %v954_v53 }
 0x1e5   :  { %v1235_v54 = vadd.f32 %v1234_v40, %v2758_v27  ;;  %v2823_v27 = vsub.f32 %v1447_v30, %v2817_v28 }
 0x1e6   :  { %v1291_v6 = vadd.f32 %v1290_v36, %v1230_v35  ;;  %v1526_v45 = vand.u32 4294901760, %v1525_v50  ;;  %v1302_v36 = vpop.f32.mrf.mxu3 }
 0x1e7   :  { %v1297_v62 = vadd.f32 %v1296_v51, %v1235_v54  ;;  %v1530_v1 = vand.u32 4294901760, %v2823_v27  ;;  %1566 = vmatpush.msrb.mxu2 %v2823_v27 }
 0x1e8   :  { %1527 = vmatpush.msra.mxu3 %v1526_v45 }
 0x1e9   :  { %v1531_v19 = vsub.f32 %v2823_v27, %v1530_v1 }
 0x1eb   :  { %v1125_v55 = vpop.f32.mrf.mxu0  ;;  %v2762_v4 = vpop.f32.mrf.mxu1  ;;  %v1532_v40 = vand.u32 4294901760, %v1531_v19 }
 0x1ec   :  { %v2766_v14 = vadd.f32 %v1187_v42, %v1125_v55 }
 0x1ed   :  { %1533 = vmatpush.msra.mxu3 %v1532_v40 }
 0x1ee   :  { %v1308_v51 = vpop.f32.mrf.mxu3 }
 0x1ef   :  { %1591 = vmatpush.msrb.mxu3 %v2764_v23 }
 0x1f1   :  { %1593 = vmatpush.msrb.mxu3 %v2782_v26 }
 0x1f3   :  { %v2776_v25 = vpop.f32.mrf.mxu0  ;;  %v2778_v0 = vpop.f32.mrf.mxu1  ;;  %1595 = vmatpush.msrb.mxu3 %v2800_v57 }
 0x1f5   :  { %1597 = vmatpush.msrb.mxu3 %v2817_v28 }
 0x1fb   :  { %v2780_v20 = vpop.f32.mrf.mxu0  ;;  %v1394_v11 = vpop.f32.mrf.mxu1 }
 0x203   :  { %v1344_v34 = vpop.f32.mrf.mxu0  ;;  %v1398_v31 = vpop.f32.mrf.mxu1 }
 0x204   :  { %v1345_v42 = vadd.f32 %v1344_v34, %v1279_v44 }
 0x206   :  { %v1395_v55 = vadd.f32 %v1394_v11, %v1345_v42  ;;  %v1239_v11 = vpop.f32.mrf.mxu2 }
 0x208   :  { %v1425_v60 = vmul.f32 %v1395_v55, %v1003_v52 }
 0x20a   :  { %v1433_v22 = vsel %vm105_vm0, %v1425_v60, 0.0  ;;  %v1314_v60 = vpop.f32.mrf.mxu3 }
 0x20b   :  { %v1348_v49 = vpop.f32.mrf.mxu0  ;;  %v1402_v7 = vpop.f32.mrf.mxu1 }
 0x20c   :  { %v1349_v59 = vadd.f32 %v1348_v49, %v1285_v3 }
 0x20e   :  { %v1399_v58 = vadd.f32 %v1398_v31, %v1349_v59  ;;  %v1240_v31 = vadd.f32 %v1239_v11, %v2760_v41  ;;  %v1244_v32 = vpop.f32.mrf.mxu2 }
 0x210   :  { %v1426_v49 = vmul.f32 %v1399_v58, %v1007_v43  ;;  %v1303_v35 = vadd.f32 %v1302_v36, %v1240_v31 }
 0x212   :  { %v1440_v42 = vsel %vm105_vm0, %v1426_v49, 0.0 }
 0x213   :  { %v1352_v17 = vpop.f32.mrf.mxu0  ;;  %v1406_v56 = vpop.f32.mrf.mxu1 }
 0x214   :  { %v1353_v8 = vadd.f32 %v1352_v17, %v1291_v6  ;;  %v1192_v17 = vadd.f32 %v2762_v4, %v2776_v25 }
 0x216   :  { %v1403_v29 = vadd.f32 %v1402_v7, %v1353_v8  ;;  %v1249_v3 = vpop.f32.mrf.mxu2 }
 0x218   :  { %v1427_v34 = vmul.f32 %v1403_v29, %v2720_v33 }
 0x21a   :  { %v1434_v39 = vsel %vm105_vm0, %v1427_v34, 0.0 }
 0x21b   :  { %v1435_v5 = vadd.f32 %v1434_v39, %v1433_v22  ;;  %v1356_v15 = vpop.f32.mrf.mxu0  ;;  %v1410_v38 = vpop.f32.mrf.mxu1 }
 0x21c   :  { %v1357_v33 = vadd.f32 %v1356_v15, %v1297_v62  ;;  %v1320_v39 = vpop.f32.mrf.mxu3 }
 0x21e   :  { %v1407_v7 = vadd.f32 %v1406_v56, %v1357_v33  ;;  %v1250_v56 = vadd.f32 %v1249_v3, %v1192_v17  ;;  %v1254_v34 = vpop.f32.mrf.mxu2 }
 0x220   :  { %v1428_v44 = vmul.f32 %v1407_v7, %v2726_v61  ;;  %v1245_v61 = vadd.f32 %v1244_v32, %v2766_v14  ;;  %v1315_v29 = vadd.f32 %v1314_v60, %v1250_v56 }
 0x222   :  { %v1441_v41 = vsel %vm105_vm0, %v1428_v44, 0.0  ;;  %v1309_v52 = vadd.f32 %v1308_v51, %v1245_v61 }
 0x223   :  { %v1442_v24 = vadd.f32 %v1441_v41, %v1440_v42  ;;  %v1360_v37 = vpop.f32.mrf.mxu0  ;;  %v1414_v50 = vpop.f32.mrf.mxu1 }
 0x224   :  { %v1361_v2 = vadd.f32 %v1360_v37, %v1303_v35 }
 0x226   :  { %v1411_v6 = vadd.f32 %v1410_v38, %v1361_v2 }
 0x228   :  { %v1429_v55 = vmul.f32 %v1411_v6, %v2733_v9  ;;  %v1196_v9 = vadd.f32 %v2778_v0, %v2780_v20 }
 0x22a   :  { %v1436_v16 = vsel %vm105_vm0, %v1429_v55, 0.0  ;;  %v1255_v62 = vadd.f32 %v1254_v34, %v1196_v9 }
 0x22b   :  { %v1437_v8 = vadd.f32 %v1436_v16, %v1435_v5  ;;  %v1364_v45 = vpop.f32.mrf.mxu0  ;;  %v1418_v53 = vpop.f32.mrf.mxu1 }
 0x22c   :  { %v1365_v54 = vadd.f32 %v1364_v45, %v1309_v52  ;;  %v1321_v36 = vadd.f32 %v1320_v39, %v1255_v62 }
 0x22e   :  { %v1415_v14 = vadd.f32 %v1414_v50, %v1365_v54 }
 0x230   :  { %v1430_v59 = vmul.f32 %v1415_v14, %v2740_v12  ;;  %v2142_v14 = vmov 32.0  }
 0x231   :  { %2029 = vrcp.f32 %v2142_v14 }
 0x232   :  { %v1443_v11 = vsel %vm105_vm0, %v1430_v59, 0.0 }
 0x233   :  { %v1444_v30 = vadd.f32 %v1443_v11, %v1442_v24  ;;  %v1368_v4 = vpop.f32.mrf.mxu0  ;;  %v1422_v20 = vpop.f32.mrf.mxu1 }
 0x234   :  { %v1369_v25 = vadd.f32 %v1368_v4, %v1315_v29  ;;  %v1743_v29 = vld [vmem:[#allocation7 + $0x18] sm:$0xff] }
 0x235   :  { %v1762_v9 = vand.u32 4294901760, %v1743_v29 }
 0x236   :  { %v1419_v22 = vadd.f32 %v1418_v53, %v1369_v25 }
 0x237   :  { %v2030_v60 = vpop.eup %2029  ;;  %1880 = vmatpush.msrb.mxu1 %v1762_v9 }
 0x238   :  { %v1431_v58 = vmul.f32 %v1419_v22, %v2745_v48  ;;  %v1684_v59 = vmul.f32 32.0, %v2030_v60  ;;  %vm1688_vm11 = vweird.f32 %v2030_v60 }
 0x23a   :  { %v1438_v5 = vsel %vm105_vm0, %v1431_v58, 0.0  ;;  %v1685_v11 = vsub.f32 1.0, %v1684_v59 }
 0x23b   :  { %v1439_v12 = vadd.f32 %v1438_v5, %v1437_v8  ;;  %v1372_v15 = vpop.f32.mrf.mxu0 }
 0x23c   :  { %v1373_v43 = vadd.f32 %v1372_v15, %v1321_v36  ;;  %v1686_v53 = vmul.f32 %v2030_v60, %v1685_v11 }
 0x23d   :  { %v1456_v0 = vsel %vm105_vm0, %v1439_v12, 0 }
 0x23e   :  { %v1481_v33 = vand.u32 4294901760, %v1456_v0  ;;  %v1423_v31 = vadd.f32 %v1422_v20, %v1373_v43  ;;  %v1687_v4 = vadd.f32 %v2030_v60, %v1686_v53 }
 0x240   :  { %v1482_v49 = vsub.f32 %v1456_v0, %v1481_v33  ;;  %v1432_v7 = vmul.f32 %v1423_v31, %v2749_v46  ;;  %1535 = vmatmul.f32.vlgmr.msra.gmra.mxu3 %v1481_v33  ;;  %v1689_v25 = vsel %vm1688_vm11, %v2030_v60, %v1687_v4  ;;  %v1742_v0 = vld [vmem:[#allocation7 + $0x10] sm:$0xff] }
 0x241   :  { %1661 = vmatpush.msra.mxu3 %v2764_v23  ;;  %v1764_v20 = vand.u32 4294901760, %v1742_v0 }
 0x242   :  { %v1445_v48 = vsel %vm105_vm0, %v1432_v7, 0.0  ;;  %v1483_v19 = vand.u32 4294901760, %v1482_v49 }
 0x243   :  { %v1446_v38 = vadd.f32 %v1445_v48, %v1444_v30  ;;  %1663 = vmatpush.msra.mxu3 %v2782_v26  ;;  %v1800_v30 = vsub.f32 %v1743_v29, %v1762_v9  ;;  %v1806_v31 = vsub.f32 %v1742_v0, %v1764_v20  ;;  %1882 = vmatpush.msrb.mxu1 %v1764_v20  ;;  %v1740_v48 = vld [vmem:[#allocation7] sm:$0xff] }
 0x244   :  { %v1484_v44 = vsub.f32 %v1482_v49, %v1483_v19 }
 0x245   :  { %v1459_v40 = vsel %vm105_vm0, %v1446_v38, 0  ;;  %1665 = vmatpush.msra.mxu3 %v2800_v57  ;;  %1846 = vmatpush.msrb.mxu0 %v1800_v30 }
 0x246   :  { %v1485_v32 = vand.u32 4294901760, %v1484_v44  ;;  %v1489_v35 = vand.u32 4294901760, %v1459_v40  ;;  %v1807_v44 = vand.u32 4294901760, %v1806_v31 }
 0x247   :  { %1667 = vmatpush.msra.mxu3 %v2817_v28  ;;  %1849 = vmatpush.msrb.mxu0 %v1806_v31 }
 0x248   :  { %1486 = vmatmul.f32.vlgmr.msra.gmra.mxu2 %v1485_v32  ;;  %1539 = vmatmul.f32.gmra.mxu3 %v1489_v35  ;;  %v1490_v46 = vsub.f32 %v1459_v40, %v1489_v35  ;;  %v1768_v40 = vand.u32 4294901760, %v1740_v48 }
 0x249   :  { %1626 = vmatpush.msra.mxu2 %v1512_v63 }
 0x24a   :  { %v1491_v23 = vand.u32 4294901760, %v1490_v46 }
 0x24b   :  { %1630 = vmatpush.msra.mxu2 %v1518_v13 }
 0x24c   :  { %v1492_v26 = vsub.f32 %v1490_v46, %v1491_v23 }
 0x24d   :  { %1634 = vmatpush.msra.mxu2 %v1524_v10  ;;  %v2005_v10 = vld [vmem:[%s2921_s6] ss:$0 sm:$0xff] }
 0x24e   :  { %v1493_v42 = vand.u32 4294901760, %v1492_v26 }
 0x24f   :  { %1638 = vmatpush.msra.mxu2 %v1530_v1 }
 0x250   :  { %1494 = vmatmul.f32.gmra.mxu2 %v1493_v42  ;;  %1601 = vmatmul.f32.vlgmr.msrb.gmra.mxu3 %v1483_v19 }
 0x258   :  { %1569 = vmatmul.f32.vlgmr.msrb.gmra.mxu2 %v1482_v49  ;;  %1607 = vmatmul.f32.gmra.mxu3 %v1491_v23  ;;  %v1801_v49 = vand.u32 4294901760, %v1800_v30  ;;  %v1818_v23 = vsub.f32 %v1740_v48, %v1768_v40 }
 0x259   :  { %1763 = vmatpush.msrb.mxu2 %v1762_v9 }
 0x25a   :  { %v1802_v19 = vsub.f32 %v1800_v30, %v1801_v49 }
 0x25b   :  { %1765 = vmatpush.msrb.mxu2 %v1764_v20 }
 0x25c   :  { %v1803_v32 = vand.u32 4294901760, %v1802_v19 }
 0x25e   :  { %1804 = vmatpush.msrb.mxu3 %v1803_v32 }
 0x260   :  { %1574 = vmatmul.f32.gmra.mxu2 %v1490_v46  ;;  %1669 = vmatmul.f32.vlgmr.msra.gmra.mxu3 %v1481_v33 }
 0x268   :  { %1640 = vmatmul.f32.vlgmr.msra.gmra.mxu2 %v1481_v33  ;;  %1673 = vmatmul.f32.gmra.mxu3 %v1489_v35  ;;  %v1741_v33 = vld [vmem:[#allocation7 + $0x8] sm:$0xff] }
 0x269   :  { %v1766_v7 = vand.u32 4294901760, %v1741_v33 }
 0x26b   :  { %v1812_v38 = vsub.f32 %v1741_v33, %v1766_v7  ;;  %1884 = vmatpush.msrb.mxu1 %v1766_v7  ;;  %1767 = vmatpush.msrb.mxu2 %v1766_v7 }
 0x26d   :  { %1852 = vmatpush.msrb.mxu0 %v1812_v38  ;;  %v1813_v46 = vand.u32 4294901760, %v1812_v38  ;;  %1886 = vmatpush.msrb.mxu1 %v1768_v40 }
 0x26e   :  { %1769 = vmatpush.msrb.mxu2 %v1768_v40 }
 0x26f   :  { %v1814_v42 = vsub.f32 %v1812_v38, %v1813_v46  ;;  %1855 = vmatpush.msrb.mxu0 %v1818_v23 }
 0x270   :  { %1644 = vmatmul.f32.gmra.mxu2 %v1489_v35  ;;  %v1808_v35 = vsub.f32 %v1806_v31, %v1807_v44 }
 0x271   :  { %1915 = vmatpush.msra.mxu2 %v1801_v49 }
 0x272   :  { %v1809_v26 = vand.u32 4294901760, %v1808_v35 }
 0x273   :  { %1919 = vmatpush.msra.mxu2 %v1807_v44 }
 0x274   :  { %1810 = vmatpush.msrb.mxu3 %v1809_v26  ;;  %v2008_v26 = vld [vmem:[%s2925_s10] ss:$0 sm:$0xff] }
 0x275   :  { %1923 = vmatpush.msra.mxu2 %v1813_v46 }
 0x2c3   :  { %v1536_v21 = vpop.f32.mrf.mxu3 }
 0x2cb   :  { %v1487_v63 = vpop.f32.mrf.mxu2  ;;  %v1540_v18 = vpop.f32.mrf.mxu3 }
 0x2cc   :  { %v1488_v28 = vadd.f32 %v2005_v10, %v1487_v63  ;;  %v1815_v63 = vand.u32 4294901760, %v1814_v42 }
 0x2ce   :  { %v1537_v41 = vadd.f32 %v1536_v21, %v1488_v28  ;;  %v1819_v21 = vand.u32 4294901760, %v1818_v23  ;;  %1816 = vmatpush.msrb.mxu3 %v1815_v63 }
 0x2d0   :  { %1927 = vmatpush.msra.mxu2 %v1819_v21 }
 0x2d3   :  { %v1495_v13 = vpop.f32.mrf.mxu2  ;;  %v1602_v57 = vpop.f32.mrf.mxu3 }
 0x2d4   :  { %v1496_v37 = vadd.f32 %v2005_v10, %v1495_v13 }
 0x2d6   :  { %v1541_v6 = vadd.f32 %v1540_v18, %v1496_v37  ;;  %v1820_v18 = vsub.f32 %v1818_v23, %v1819_v21 }
 0x2db   :  { %v1570_v47 = vpop.f32.mrf.mxu2  ;;  %v1608_v27 = vpop.f32.mrf.mxu3 }
 0x2dc   :  { %v1571_v24 = vadd.f32 %v1570_v47, %v1537_v41 }
 0x2de   :  { %v1603_v2 = vadd.f32 %v1602_v57, %v1571_v24  ;;  %v1821_v57 = vand.u32 4294901760, %v1820_v18 }
 0x2e0   :  { %1822 = vmatpush.msrb.mxu3 %v1821_v57 }
 0x2e2   :  { %1950 = vmatpush.msra.mxu3 %v1762_v9 }
 0x2e3   :  { %v1575_v1 = vpop.f32.mrf.mxu2  ;;  %v1670_v51 = vpop.f32.mrf.mxu3 }
 0x2e4   :  { %v1576_v50 = vadd.f32 %v1575_v1, %v1541_v6  ;;  %1952 = vmatpush.msra.mxu3 %v1764_v20 }
 0x2e6   :  { %v1609_v16 = vadd.f32 %v1608_v27, %v1576_v50  ;;  %1954 = vmatpush.msra.mxu3 %v1766_v7  ;;  %v2006_v50 = vld [vmem:[%s2922_s7] ss:$0 sm:$0xff] }
 0x2e8   :  { %1956 = vmatpush.msra.mxu3 %v1768_v40 }
 0x2eb   :  { %v1641_v61 = vpop.f32.mrf.mxu2  ;;  %v1674_v45 = vpop.f32.mrf.mxu3 }
 0x2ec   :  { %v1642_v55 = vadd.f32 %v1641_v61, %v1603_v2 }
 0x2ee   :  { %v2872_v52 = vadd.f32 %v1670_v51, %v1642_v55 }
 0x2f0   :  { %v1677_v17 = vsel %vm105_vm0, %v2872_v52, 0.0 }
 0x2f1   :  { %1678 = vadd.xlane.f32.xlu0 %v1677_v17 }
 0x2f3   :  { %v1645_v3 = vpop.f32.mrf.mxu2 }
 0x2f4   :  { %v1646_v8 = vadd.f32 %v1645_v3, %v1609_v16  ;;  %v2007_v3 = vld [vmem:[%s2923_s8] ss:$0 sm:$0xff] }
 0x2f6   :  { %v2876_v54 = vadd.f32 %v1674_v45, %v1646_v8 }
 0x2f8   :  { %v1680_v56 = vsel %vm105_vm0, %v2876_v54, 0.0 }
 0x2f9   :  { %1681 = vadd.xlane.f32.xlu0 %v1680_v56 }
 0x364   :  { %v1679_v34 = vpop.xlane.xlu0 %1678 }
 0x365   :  { %v1690_v62 = vmul.f32 %v1689_v25, %v1679_v34 }
 0x367   :  { %v2881_v22 = vsub.f32 %v2872_v52, %v1690_v62 }
 0x369   :  { %v1694_v58 = vmul.f32 %v2881_v22, %v2881_v22 }
 0x36b   :  { %v1696_v39 = vsel %vm105_vm0, %v1694_v58, 0.0 }
 0x36c   :  { %1697 = vadd.xlane.f32.xlu1 %v1696_v39  ;;  %v1682_v36 = vpop.xlane.xlu0 %1681 }
 0x36d   :  { %v1691_v5 = vmul.f32 %v1689_v25, %v1682_v36 }
 0x36f   :  { %v2887_v12 = vsub.f32 %v2876_v54, %v1691_v5 }
 0x371   :  { %v1695_v15 = vmul.f32 %v2887_v12, %v2887_v12 }
 0x373   :  { %v1699_v43 = vsel %vm105_vm0, %v1695_v15, 0.0 }
 0x374   :  { %1700 = vadd.xlane.f32.xlu1 %v1699_v43 }
 0x3df   :  { %v1698_v13 = vpop.xlane.xlu1 %1697 }
 0x3e0   :  { %v1702_v47 = vmul.f32 %v1698_v13, %v1689_v25 }
 0x3e2   :  { %v1704_v10 = vadd.f32 1e-05, %v1702_v47 }
 0x3e4   :  { %2031 = vrsqrt.f32 %v1704_v10  ;;  %vm1712_vm13 = vweird.f32 %v1704_v10 }
 0x3e7   :  { %v1701_v28 = vpop.xlane.xlu1 %1700 }
 0x3e8   :  { %v1703_v27 = vmul.f32 %v1701_v28, %v1689_v25 }
 0x3ea   :  { %v2032_v1 = vpop.eup %2031  ;;  %v1705_v41 = vadd.f32 1e-05, %v1703_v27 }
 0x3eb   :  { %v1707_v24 = vmul.f32 %v2032_v1, %v1704_v10  ;;  %vm1713_vm12 = vweird.f32 %v2032_v1 }
 0x3ec   :  { %2033 = vrsqrt.f32 %v1705_v41  ;;  %vm1714_vm14 = vmor %vm1712_vm13, %vm1713_vm12  ;;  %vm1722_vm1 = vweird.f32 %v1705_v41 }
 0x3ed   :  { %v1708_v37 = vmul.f32 %v2032_v1, %v1707_v24 }
 0x3ef   :  { %v1709_v2 = vmul.f32 0.5, %v1708_v37 }
 0x3f1   :  { %v1710_v51 = vsub.f32 1.5, %v1709_v2 }
 0x3f2   :  { %v2034_v61 = vpop.eup %2033 }
 0x3f3   :  { %v1711_v6 = vmul.f32 %v2032_v1, %v1710_v51  ;;  %v1717_v55 = vmul.f32 %v2034_v61, %v1705_v41  ;;  %vm1723_vm15 = vweird.f32 %v2034_v61 }
 0x3f4   :  { %vm1724_vm2 = vmor %vm1722_vm1, %vm1723_vm15 }
 0x3f5   :  { %v1715_v17 = vsel %vm1714_vm14, %v2032_v1, %v1711_v6  ;;  %v1718_v16 = vmul.f32 %v2034_v61, %v1717_v55 }
 0x3f6   :  { %v1726_v8 = vmul.f32 %v1715_v17, %v2881_v22 }
 0x3f7   :  { %v1719_v45 = vmul.f32 0.5, %v1718_v16 }
 0x3f8   :  { %v1732_v56 = vmul.f32 %v2006_v50, %v1726_v8 }
 0x3f9   :  { %v1720_v14 = vsub.f32 1.5, %v1719_v45 }
 0x3fa   :  { %v1738_v60 = vadd.f32 %v2007_v3, %v1732_v56 }
 0x3fb   :  { %v1721_v59 = vmul.f32 %v2034_v61, %v1720_v14 }
 0x3fc   :  { %v1745_v29 = vsel %vm105_vm0, %v1738_v60, 0 }
 0x3fd   :  { %v1725_v9 = vsel %vm1724_vm2, %v2034_v61, %v1721_v59  ;;  %v1770_v11 = vand.u32 4294901760, %v1745_v29 }
 0x3fe   :  { %v1727_v30 = vmul.f32 %v1725_v9, %v2887_v12 }
 0x3ff   :  { %1824 = vmatmul.f32.vlgmr.msrb.gmra.mxu3 %v1770_v11  ;;  %v1771_v53 = vsub.f32 %v1745_v29, %v1770_v11 }
 0x400   :  { %v1733_v4 = vmul.f32 %v2006_v50, %v1727_v30 }
 0x401   :  { %1858 = vmatmul.f32.vlgmr.msrb.gmra.mxu0 %v1771_v53  ;;  %v1772_v25 = vand.u32 4294901760, %v1771_v53 }
 0x402   :  { %v1739_v34 = vadd.f32 %v2007_v3, %v1733_v4 }
 0x403   :  { %1890 = vmatmul.f32.vlgmr.msrb.gmra.mxu1 %v1772_v25  ;;  %v1773_v62 = vsub.f32 %v1771_v53, %v1772_v25 }
 0x404   :  { %v1748_v22 = vsel %vm105_vm0, %v1739_v34, 0 }
 0x405   :  { %v1774_v58 = vand.u32 4294901760, %v1773_v62  ;;  %v1778_v39 = vand.u32 4294901760, %v1748_v22 }
 0x407   :  { %1775 = vmatmul.f32.vlgmr.msrb.gmra.mxu2 %v1774_v58  ;;  %1828 = vmatmul.f32.gmra.mxu3 %v1778_v39  ;;  %v1779_v36 = vsub.f32 %v1748_v22, %v1778_v39 }
 0x409   :  { %1863 = vmatmul.f32.gmra.mxu0 %v1779_v36  ;;  %v1780_v5 = vand.u32 4294901760, %v1779_v36 }
 0x40b   :  { %1896 = vmatmul.f32.gmra.mxu1 %v1780_v5  ;;  %v1781_v15 = vsub.f32 %v1779_v36, %v1780_v5 }
 0x40d   :  { %v1782_v12 = vand.u32 4294901760, %v1781_v15 }
 0x40f   :  { %1783 = vmatmul.f32.gmra.mxu2 %v1782_v12  ;;  %1958 = vmatmul.f32.vlgmr.msra.gmra.mxu3 %v1770_v11 }
 0x417   :  { %1929 = vmatmul.f32.vlgmr.msra.gmra.mxu2 %v1770_v11  ;;  %1962 = vmatmul.f32.gmra.mxu3 %v1778_v39 }
 0x41f   :  { %1933 = vmatmul.f32.gmra.mxu2 %v1778_v39 }
 0x47e   :  { %v1859_v31 = vpop.f32.mrf.mxu0 }
 0x480   :  { %v1891_v48 = vpop.f32.mrf.mxu1 }
 0x482   :  { %v1825_v43 = vpop.f32.mrf.mxu3 }
 0x486   :  { %v1864_v35 = vpop.f32.mrf.mxu0 }
 0x488   :  { %v1897_v21 = vpop.f32.mrf.mxu1 }
 0x48a   :  { %v1776_v0 = vpop.f32.mrf.mxu2  ;;  %v1829_v20 = vpop.f32.mrf.mxu3 }
 0x48b   :  { %v1826_v33 = vadd.f32 %v1825_v43, %v1776_v0 }
 0x48d   :  { %v1860_v7 = vadd.f32 %v1859_v31, %v1826_v33 }
 0x48f   :  { %v1892_v38 = vadd.f32 %v1891_v48, %v1860_v7 }
 0x492   :  { %v1784_v49 = vpop.f32.mrf.mxu2  ;;  %v1959_v44 = vpop.f32.mrf.mxu3 }
 0x493   :  { %v1830_v19 = vadd.f32 %v1829_v20, %v1784_v49 }
 0x495   :  { %v1865_v46 = vadd.f32 %v1864_v35, %v1830_v19 }
 0x497   :  { %v1898_v18 = vadd.f32 %v1897_v21, %v1865_v46 }
 0x49a   :  { %v1930_v40 = vpop.f32.mrf.mxu2  ;;  %v1963_v47 = vpop.f32.mrf.mxu3 }
 0x49b   :  { %v1931_v32 = vadd.f32 %v1930_v40, %v1892_v38 }
 0x49d   :  { %v1960_v23 = vadd.f32 %v1959_v44, %v1931_v32 }
 0x49f   :  { %v1966_v42 = vadd.f32 %v1960_v23, %v2872_v52 }
 0x4a1   :  { %v1972_v63 = vadd.f32 %v2008_v26, %v1966_v42 }
 0x4a2   :  { %v1934_v13 = vpop.f32.mrf.mxu2 }
 0x4a3   :  { %1974 = vst.msk [vmem:[#allocation8] sm:$0xff] %vm105_vm0, %v1972_v63  ;;  %v1935_v57 = vadd.f32 %v1934_v13, %v1898_v18 }
 0x4a5   :  { %v1964_v10 = vadd.f32 %v1963_v47, %v1935_v57 }
 0x4a7   :  { %v1967_v28 = vadd.f32 %v1964_v10, %v2876_v54 }
 0x4a9   :  { %v1973_v27 = vadd.f32 %v2008_v26, %v1967_v28 }
 0x4ab   :  { %1975 = vst.msk [vmem:[#allocation8 + $0x8] sm:$0xff] %vm105_vm0, %v1973_v27 }
 0x4ac   :  { %1988 = dma.vmem_to_hbm [thread:$0]  %s1981_s21, 256, %s1983_s24, [#allocation4], %s2138_s29, %s2138_s29, %s2139_s30  }
 0x4ad   :  { %2135 = dma.done.wait [#allocation4], 256  }
 0x4ae   :  { %2136 = vsyncadd [#allocation4], 4294967040 }
 0x4af   :  { %1993 = vsyncpa [#allocation3], 1 }
 0x4b0   :  { %1994 = vsyncpa [#allocation6], 1 }
 0x4b1   :  { %1995 = vsyncpa [#allocation4], 1 }

</bundles_post_ra>
